<compile_context>
chip_gen: v5e
topology: v5e:2x2
jax: 0.10.0
libtpu: 0.0.40
codegen_flags: <defaults>
</compile_context>

<pallas_src>
import functools

import numpy as np
import jax
import jax.numpy as jnp
from jax import lax
from jax.experimental import pallas as pl
from jax.experimental.pallas import tpu as pltpu


ALPHA = 0.99         # TPN propagation coefficient
SIGMA = 1.0          # Gaussian affinity bandwidth
N_PROP_ITERS = 10    # iterative approximation of (I - alpha*S)^-1 @ Y
LANE_PAD = 128       # pad the class dimension to a full lane group
_VMEM_LIMIT = 48 * 1024 * 1024   # fits v5e/v6e (128 MiB) and v7x (64 MiB) physical VMEM
# TODO(synk): MGCN_LabelPropagation_A_TPN_Proto source is not provided; the graph
# embedding / propagation above is a faithful-in-spirit synthetic stand-in.
# TODO(synk): single-block TPN kernel caps N at the VMEM budget (~16-24*N^2 bytes);
# for very large superpixel counts, stream row blocks of the affinity matrix.


# ----------------------------- Kernel 1: MGCN + TPN ----------------------------- #
def _tpn_kernel(feat_ref, w1_ref, w2_ref, y_ref, out_ref, *, way, n_shot):
    # ---- MGCN-style 2-layer embedding: bf16 MXU operands, f32 accumulation ----
    x = feat_ref[...]                                                      # [N, D] bf16
    h = jnp.maximum(
        jnp.dot(x, w1_ref[...], preferred_element_type=jnp.float32), 0.0)  # [N, H] f32
    z = jnp.dot(h.astype(jnp.bfloat16), w2_ref[...],
                preferred_element_type=jnp.float32)                        # [N, H] f32
    zb = z.astype(jnp.bfloat16)

    # ---- Gaussian affinity W_ij = exp(-||z_i - z_j||^2 / 2 sigma^2) ----
    # Gram matrix: contract the feature axis of BOTH operands (no materialized z.T).
    g = lax.dot_general(zb, zb, (((1,), (1,)), ((), ())),
                        preferred_element_type=jnp.float32)                # [N, N]
    z2 = z * z
    sq_col = jnp.sum(z2, axis=-1, keepdims=True)                           # [N, 1]
    # Row broadcast of squared norms through the MXU instead of an XLU transpose.
    ones_row = jnp.ones((1, z2.shape[1]), jnp.float32)
    sq_row = lax.dot_general(ones_row, z2, (((1,), (1,)), ((), ())),
                             preferred_element_type=jnp.float32)           # [1, N]
    d2 = jnp.maximum(sq_col + sq_row - 2.0 * g, 0.0)
    w = jnp.exp(d2 * (-1.0 / (2.0 * SIGMA * SIGMA)))                       # [N, N], w_ii ~= 1

    # ---- symmetric normalization with analytic diagonal removal (w_ii == 1) ----
    dsum = jnp.maximum(jnp.sum(w, axis=-1, keepdims=True) - 1.0, 1e-6)     # off-diag degree
    dinv = lax.rsqrt(dsum)                                                 # [N, 1]
    dinv2 = dinv * dinv
    wb = w.astype(jnp.bfloat16)                                            # bf16 W for MXU

    # ---- label propagation  F <- alpha * S F + (1 - alpha) * Y ----
    # S F = D^-1/2 W D^-1/2 F realised as row scalings around a W matmul; the
    # self-loop (diagonal) contribution dinv^2 * F is subtracted analytically,
    # so S is never materialized and no explicit dinv.T is needed.
    y = y_ref[...]                                                         # [N, 128] f32
    f = y
    for _ in range(N_PROP_ITERS):                                          # static unroll
        fz = (dinv * f).astype(jnp.bfloat16)
        sf = dinv * jnp.dot(wb, fz, preferred_element_type=jnp.float32) - dinv2 * f
        f = ALPHA * sf + (1.0 - ALPHA) * y

    # ---- masked softmax over the first `way` lanes, query rows only ----
    fq = f[n_shot:, :]                                                     # static row slice
    lane = lax.broadcasted_iota(jnp.int32, fq.shape, 1)
    fq = jnp.where(lane < way, fq, -1e30)
    m = jnp.max(fq, axis=-1, keepdims=True)
    e = jnp.exp(fq - m)
    inv = pl.reciprocal(jnp.sum(e, axis=-1, keepdims=True), approx=True)
    out_ref[...] = e * inv                                                 # [Nq, 128] lane-dense


def tpn_propagate(feat, w1, w2, y_pad, *, way, n_shot):
    n, d = feat.shape
    hdim = w1.shape[1]
    nq = n - n_shot
    kernel = functools.partial(_tpn_kernel, way=way, n_shot=n_shot)
    return pl.pallas_call(
        kernel,
        out_shape=jax.ShapeDtypeStruct((nq, LANE_PAD), jnp.float32),
        grid=(1,),
        in_specs=[
            pl.BlockSpec((n, d), lambda i: (0, 0)),
            pl.BlockSpec((d, hdim), lambda i: (0, 0)),
            pl.BlockSpec((hdim, hdim), lambda i: (0, 0)),
            pl.BlockSpec((n, LANE_PAD), lambda i: (0, 0)),
        ],
        out_specs=pl.BlockSpec((nq, LANE_PAD), lambda i: (0, 0)),
        compiler_params=pltpu.CompilerParams(
            dimension_semantics=("arbitrary",),
            vmem_limit_bytes=_VMEM_LIMIT),
    )(feat.astype(jnp.bfloat16), w1.astype(jnp.bfloat16),
      w2.astype(jnp.bfloat16), y_pad)


# --------------------------- Kernel 2: label_to_mask ---------------------------- #
def _mask_kernel(rows_ref, logits_ref, out_ref):
    rows = rows_ref[0]                                   # [1, TP] int32, -1 == "no logit"
    num_rows = logits_ref.shape[0]
    tp = rows.shape[1]
    # onehot[l, p] = (pixel p maps to logit row l); rows of -1 give all-zero columns.
    row_ids = lax.broadcasted_iota(jnp.int32, (num_rows, tp), 0)
    onehot = (rows == row_ids).astype(jnp.float32)       # [L, TP]
    # Transposed product logits^T @ onehot -> lane-dense [way, TP] output block.
    out_ref[0] = lax.dot_general(
        logits_ref[...], onehot, (((0,), (0,)), ((), ())),
        preferred_element_type=jnp.float32)


def label_to_mask_pallas(pixel_to_row, logits, *, tile_p=2048):
    # pixel_to_row: [Q, 1, P] int32, logits: [L, way] f32 -> [Q, way, P] f32
    q, _, p = pixel_to_row.shape
    l, way = logits.shape
    tp = min(tile_p, p)
    return pl.pallas_call(
        _mask_kernel,
        out_shape=jax.ShapeDtypeStruct((q, way, p), jnp.float32),
        grid=(q, pl.cdiv(p, tp)),
        in_specs=[
            pl.BlockSpec((1, 1, tp), lambda i, j: (i, 0, j)),
            pl.BlockSpec((l, way), lambda i, j: (0, 0)),
        ],
        out_specs=pl.BlockSpec((1, way, tp), lambda i, j: (i, 0, j)),
        compiler_params=pltpu.CompilerParams(
            dimension_semantics=("parallel", "parallel"),
            vmem_limit_bytes=_VMEM_LIMIT),
    )(pixel_to_row, logits)


def build_pixel_to_row(segments_np, num_logit_rows):
    """Host-side mirror of the reference's np.unique bookkeeping in label_to_mask."""
    num_segments, size, _ = segments_np.shape
    pix = np.full((num_segments, size, size), -1, dtype=np.int32)
    index = 0
    for i in range(num_segments):
        temp = np.unique(segments_np[i])
        for j in range(len(temp)):
            if index < num_logit_rows:
                pix[i][segments_np[i] == temp[j]] = index
                index += 1
    return pix


# --------------------------------- Module glue ---------------------------------- #
class MGCNTPNClassifier:
    def __init__(self, way, shot, feat_dim, hidden_dim, key):
        self.way = way
        self.shot = shot
        k1, k2 = jax.random.split(key)
        # deterministic synthetic weights (the module's __init__ builds the inner model)
        self.w1 = jax.random.normal(k1, (feat_dim, hidden_dim), jnp.float32) * 0.1
        self.w2 = jax.random.normal(k2, (hidden_dim, hidden_dim), jnp.float32) * 0.1

    def forward(self, feature_superpixel, label_superpixel_shot,
                label_superpixel_query, slic_npy):
        size = slic_npy.shape[1]
        n_shot_sp = int(label_superpixel_shot.shape[0])
        n_total = int(feature_superpixel.shape[0])

        # one-hot support labels, zero-padded to 128 lanes; query rows stay zero
        y_shot = jax.nn.one_hot(label_superpixel_shot, self.way, dtype=jnp.float32)
        y_pad = jnp.zeros((n_total, LANE_PAD), jnp.float32)
        y_pad = y_pad.at[:n_shot_sp, :self.way].set(y_shot)

        # query-row class probabilities, lane-padded in-kernel, sliced outside
        p_query_pad = tpn_propagate(
            feature_superpixel.astype(jnp.float32), self.w1, self.w2, y_pad,
            way=self.way, n_shot=n_shot_sp)                        # [Nq, 128]
        predict_p = p_query_pad[:, :self.way]                      # [Nq, way]
        pred_label = jnp.argmax(predict_p, axis=-1)                # parity with reference output
        del pred_label, label_superpixel_query                     # query labels only used for loss

        query_segments = np.asarray(slic_npy)[self.shot:]
        pixel_to_row = build_pixel_to_row(query_segments, int(predict_p.shape[0]))
        q = query_segments.shape[0]
        pixel_to_row = jnp.asarray(
            pixel_to_row.reshape(q, 1, size * size), dtype=jnp.int32)

        mask_t = label_to_mask_pallas(pixel_to_row, predict_p)     # [Q, way, H*W]
        output = jnp.transpose(mask_t, (0, 2, 1)).reshape(q, size, size, self.way)
        return output, predict_p


if __name__ == "__main__":
    way = 4
    shot = 1                 # number of support images (first `shot` entries of slic_npy)
    num_images = 3           # 1 support + 2 query
    size = 16                # spatial size of each segmentation map
    sp_per_img = 16          # superpixels per image (4x4 blocks of 4x4 pixels)
    feat_dim = 32
    hidden_dim = 32

    n_shot_sp = shot * sp_per_img
    n_query_sp = (num_images - shot) * sp_per_img
    n_total_sp = n_shot_sp + n_query_sp

    key = jax.random.PRNGKey(0)
    k_feat, k_lab_s, k_lab_q, k_w = jax.random.split(key, 4)

    feature_superpixel = jax.random.normal(k_feat, (n_total_sp, feat_dim), jnp.float32)
    label_superpixel_shot = jax.random.randint(k_lab_s, (n_shot_sp,), 0, way, jnp.int32)
    label_superpixel_query = jax.random.randint(k_lab_q, (n_query_sp,), 0, way, jnp.int32)

    # deterministic SLIC-like segmentation: 4x4 grid of 4x4-pixel superpixels, ids 0..15
    base = ((np.arange(size)[:, None] // 4) * 4 + (np.arange(size)[None, :] // 4)).astype(np.int32)
    slic_npy = np.stack([base] * num_images, axis=0)

    model = MGCNTPNClassifier(way=way, shot=shot, feat_dim=feat_dim,
                              hidden_dim=hidden_dim, key=k_w)
    output, predict_p = model.forward(
        feature_superpixel, label_superpixel_shot, label_superpixel_query, slic_npy)

    jax.block_until_ready(output)
    jax.block_until_ready(predict_p)

    assert output.shape == (num_images - shot, size, size, way), output.shape
    assert predict_p.shape == (n_query_sp, way), predict_p.shape
    assert bool(jnp.all(jnp.isfinite(output))) and bool(jnp.all(jnp.isfinite(predict_p)))
    # per-superpixel probabilities should sum to ~1 over the real classes
    assert bool(jnp.all(jnp.abs(jnp.sum(predict_p, axis=-1) - 1.0) < 1e-2))

    print("KERNEL_OK")
</pallas_src>

<mosaic_0001>
module attributes {stable_mosaic.version = 11 : i64} {
  func.func @_tpn_kernel(%arg0: i32, %arg1: memref<48x32xbf16, #tpu.memory_space<vmem>>, %arg2: memref<32x32xbf16, #tpu.memory_space<vmem>>, %arg3: memref<32x32xbf16, #tpu.memory_space<vmem>>, %arg4: memref<48x128xf32, #tpu.memory_space<vmem>>, %arg5: memref<32x128xf32, #tpu.memory_space<vmem>>) attributes {dimension_semantics = [#tpu.dimension_semantics<arbitrary>], iteration_bounds = array<i64: 1>, scalar_prefetch = 0 : i64, scratch_operands = 0 : i64, tpu.core_type = #tpu.core_type<tc>, window_params = [{pipeline_mode = #tpu.pipeline_mode<synchronous>, transform_indices = @transform_0, window_bounds = array<i64: 48, 32>}, {pipeline_mode = #tpu.pipeline_mode<synchronous>, transform_indices = @transform_1, window_bounds = array<i64: 32, 32>}, {pipeline_mode = #tpu.pipeline_mode<synchronous>, transform_indices = @transform_2, window_bounds = array<i64: 32, 32>}, {pipeline_mode = #tpu.pipeline_mode<synchronous>, transform_indices = @transform_3, window_bounds = array<i64: 48, 128>}, {pipeline_mode = #tpu.pipeline_mode<synchronous>, transform_indices = @transform_4, window_bounds = array<i64: 32, 128>}]} {
    %c0 = arith.constant 0 : index
    %c0_0 = arith.constant 0 : index
    %0 = vector.load %arg1[%c0, %c0_0] : memref<48x32xbf16, #tpu.memory_space<vmem>>, vector<48x32xbf16>
    %c0_1 = arith.constant 0 : index
    %c0_2 = arith.constant 0 : index
    %1 = vector.load %arg2[%c0_1, %c0_2] : memref<32x32xbf16, #tpu.memory_space<vmem>>, vector<32x32xbf16>
    %cst = arith.constant dense<0.000000e+00> : vector<48x32xf32>
    %2 = tpu.matmul %0, %1, %cst {dimension_numbers = #tpu.dot_dimension_numbers<[1], [0], [0], [1], [0, 0, 1, 1], [], []>} : vector<48x32xbf16>, vector<32x32xbf16>, vector<48x32xf32> -> vector<48x32xf32>
    %cst_3 = arith.constant 0.000000e+00 : f32
    %3 = vector.broadcast %cst_3 : f32 to vector<48x32xf32>
    %4 = arith.maximumf %2, %3 : vector<48x32xf32>
    %5 = arith.truncf %4 : vector<48x32xf32> to vector<48x32xbf16>
    %c0_4 = arith.constant 0 : index
    %c0_5 = arith.constant 0 : index
    %6 = vector.load %arg3[%c0_4, %c0_5] : memref<32x32xbf16, #tpu.memory_space<vmem>>, vector<32x32xbf16>
    %cst_6 = arith.constant dense<0.000000e+00> : vector<48x32xf32>
    %7 = tpu.matmul %5, %6, %cst_6 {dimension_numbers = #tpu.dot_dimension_numbers<[1], [0], [0], [1], [0, 0, 1, 1], [], []>} : vector<48x32xbf16>, vector<32x32xbf16>, vector<48x32xf32> -> vector<48x32xf32>
    %8 = arith.truncf %7 : vector<48x32xf32> to vector<48x32xbf16>
    %cst_7 = arith.constant dense<0.000000e+00> : vector<48x48xf32>
    %9 = tpu.matmul %8, %8, %cst_7 {dimension_numbers = #tpu.dot_dimension_numbers<[1], [1], [0], [0], [0, 0, 1, 0], [], []>} : vector<48x32xbf16>, vector<48x32xbf16>, vector<48x48xf32> -> vector<48x48xf32>
    %10 = arith.mulf %7, %7 : vector<48x32xf32>
    %cst_8 = arith.constant dense<0.000000e+00> : vector<48xf32>
    %11 = vector.multi_reduction <add>, %10, %cst_8 [1] : vector<48x32xf32> to vector<48xf32>
    %12 = vector.shape_cast %11 : vector<48xf32> to vector<48x1xf32>
    %cst_9 = arith.constant 1.000000e+00 : f32
    %13 = vector.broadcast %cst_9 : f32 to vector<1x32xf32>
    %cst_10 = arith.constant dense<0.000000e+00> : vector<1x48xf32>
    %14 = tpu.matmul %13, %10, %cst_10 {dimension_numbers = #tpu.dot_dimension_numbers<[1], [1], [0], [0], [0, 0, 1, 0], [], []>} : vector<1x32xf32>, vector<48x32xf32>, vector<1x48xf32> -> vector<1x48xf32>
    %15 = vector.broadcast %12 : vector<48x1xf32> to vector<48x48xf32>
    %16 = vector.broadcast %14 : vector<1x48xf32> to vector<48x48xf32>
    %17 = arith.addf %15, %16 : vector<48x48xf32>
    %cst_11 = arith.constant 2.000000e+00 : f32
    %18 = vector.broadcast %cst_11 : f32 to vector<48x48xf32>
    %19 = arith.mulf %18, %9 : vector<48x48xf32>
    %20 = arith.subf %17, %19 : vector<48x48xf32>
    %cst_12 = arith.constant 0.000000e+00 : f32
    %21 = vector.broadcast %cst_12 : f32 to vector<48x48xf32>
    %22 = arith.maximumf %20, %21 : vector<48x48xf32>
    %cst_13 = arith.constant -5.000000e-01 : f32
    %23 = vector.broadcast %cst_13 : f32 to vector<48x48xf32>
    %24 = arith.mulf %22, %23 : vector<48x48xf32>
    %25 = math.exp %24 : vector<48x48xf32>
    %cst_14 = arith.constant dense<0.000000e+00> : vector<48xf32>
    %26 = vector.multi_reduction <add>, %25, %cst_14 [1] : vector<48x48xf32> to vector<48xf32>
    %27 = vector.shape_cast %26 : vector<48xf32> to vector<48x1xf32>
    %cst_15 = arith.constant 1.000000e+00 : f32
    %28 = vector.broadcast %cst_15 : f32 to vector<48x1xf32>
    %29 = arith.subf %27, %28 : vector<48x1xf32>
    %cst_16 = arith.constant 9.99999997E-7 : f32
    %30 = vector.broadcast %cst_16 : f32 to vector<48x1xf32>
    %31 = arith.maximumf %29, %30 : vector<48x1xf32>
    %32 = math.rsqrt %31 : vector<48x1xf32>
    %33 = arith.mulf %32, %32 : vector<48x1xf32>
    %34 = arith.truncf %25 : vector<48x48xf32> to vector<48x48xbf16>
    %c0_17 = arith.constant 0 : index
    %c0_18 = arith.constant 0 : index
    %35 = vector.load %arg4[%c0_17, %c0_18] : memref<48x128xf32, #tpu.memory_space<vmem>>, vector<48x128xf32>
    %36 = vector.broadcast %32 : vector<48x1xf32> to vector<48x128xf32>
    %37 = arith.mulf %36, %35 : vector<48x128xf32>
    %38 = arith.truncf %37 : vector<48x128xf32> to vector<48x128xbf16>
    %cst_19 = arith.constant dense<0.000000e+00> : vector<48x128xf32>
    %39 = tpu.matmul %34, %38, %cst_19 {dimension_numbers = #tpu.dot_dimension_numbers<[1], [0], [0], [1], [0, 0, 1, 1], [], []>} : vector<48x48xbf16>, vector<48x128xbf16>, vector<48x128xf32> -> vector<48x128xf32>
    %40 = vector.broadcast %32 : vector<48x1xf32> to vector<48x128xf32>
    %41 = arith.mulf %40, %39 : vector<48x128xf32>
    %42 = vector.broadcast %33 : vector<48x1xf32> to vector<48x128xf32>
    %43 = arith.mulf %42, %35 : vector<48x128xf32>
    %44 = arith.subf %41, %43 : vector<48x128xf32>
    %cst_20 = arith.constant 9.900000e-01 : f32
    %45 = vector.broadcast %cst_20 : f32 to vector<48x128xf32>
    %46 = arith.mulf %45, %44 : vector<48x128xf32>
    %cst_21 = arith.constant 0.00999999977 : f32
    %47 = vector.broadcast %cst_21 : f32 to vector<48x128xf32>
    %48 = arith.mulf %47, %35 : vector<48x128xf32>
    %49 = arith.addf %46, %48 : vector<48x128xf32>
    %50 = vector.broadcast %32 : vector<48x1xf32> to vector<48x128xf32>
    %51 = arith.mulf %50, %49 : vector<48x128xf32>
    %52 = arith.truncf %51 : vector<48x128xf32> to vector<48x128xbf16>
    %cst_22 = arith.constant dense<0.000000e+00> : vector<48x128xf32>
    %53 = tpu.matmul %34, %52, %cst_22 {dimension_numbers = #tpu.dot_dimension_numbers<[1], [0], [0], [1], [0, 0, 1, 1], [], []>} : vector<48x48xbf16>, vector<48x128xbf16>, vector<48x128xf32> -> vector<48x128xf32>
    %54 = vector.broadcast %32 : vector<48x1xf32> to vector<48x128xf32>
    %55 = arith.mulf %54, %53 : vector<48x128xf32>
    %56 = vector.broadcast %33 : vector<48x1xf32> to vector<48x128xf32>
    %57 = arith.mulf %56, %49 : vector<48x128xf32>
    %58 = arith.subf %55, %57 : vector<48x128xf32>
    %cst_23 = arith.constant 9.900000e-01 : f32
    %59 = vector.broadcast %cst_23 : f32 to vector<48x128xf32>
    %60 = arith.mulf %59, %58 : vector<48x128xf32>
    %cst_24 = arith.constant 0.00999999977 : f32
    %61 = vector.broadcast %cst_24 : f32 to vector<48x128xf32>
    %62 = arith.mulf %61, %35 : vector<48x128xf32>
    %63 = arith.addf %60, %62 : vector<48x128xf32>
    %64 = vector.broadcast %32 : vector<48x1xf32> to vector<48x128xf32>
    %65 = arith.mulf %64, %63 : vector<48x128xf32>
    %66 = arith.truncf %65 : vector<48x128xf32> to vector<48x128xbf16>
    %cst_25 = arith.constant dense<0.000000e+00> : vector<48x128xf32>
    %67 = tpu.matmul %34, %66, %cst_25 {dimension_numbers = #tpu.dot_dimension_numbers<[1], [0], [0], [1], [0, 0, 1, 1], [], []>} : vector<48x48xbf16>, vector<48x128xbf16>, vector<48x128xf32> -> vector<48x128xf32>
    %68 = vector.broadcast %32 : vector<48x1xf32> to vector<48x128xf32>
    %69 = arith.mulf %68, %67 : vector<48x128xf32>
    %70 = vector.broadcast %33 : vector<48x1xf32> to vector<48x128xf32>
    %71 = arith.mulf %70, %63 : vector<48x128xf32>
    %72 = arith.subf %69, %71 : vector<48x128xf32>
    %cst_26 = arith.constant 9.900000e-01 : f32
    %73 = vector.broadcast %cst_26 : f32 to vector<48x128xf32>
    %74 = arith.mulf %73, %72 : vector<48x128xf32>
    %cst_27 = arith.constant 0.00999999977 : f32
    %75 = vector.broadcast %cst_27 : f32 to vector<48x128xf32>
    %76 = arith.mulf %75, %35 : vector<48x128xf32>
    %77 = arith.addf %74, %76 : vector<48x128xf32>
    %78 = vector.broadcast %32 : vector<48x1xf32> to vector<48x128xf32>
    %79 = arith.mulf %78, %77 : vector<48x128xf32>
    %80 = arith.truncf %79 : vector<48x128xf32> to vector<48x128xbf16>
    %cst_28 = arith.constant dense<0.000000e+00> : vector<48x128xf32>
    %81 = tpu.matmul %34, %80, %cst_28 {dimension_numbers = #tpu.dot_dimension_numbers<[1], [0], [0], [1], [0, 0, 1, 1], [], []>} : vector<48x48xbf16>, vector<48x128xbf16>, vector<48x128xf32> -> vector<48x128xf32>
    %82 = vector.broadcast %32 : vector<48x1xf32> to vector<48x128xf32>
    %83 = arith.mulf %82, %81 : vector<48x128xf32>
    %84 = vector.broadcast %33 : vector<48x1xf32> to vector<48x128xf32>
    %85 = arith.mulf %84, %77 : vector<48x128xf32>
    %86 = arith.subf %83, %85 : vector<48x128xf32>
    %cst_29 = arith.constant 9.900000e-01 : f32
    %87 = vector.broadcast %cst_29 : f32 to vector<48x128xf32>
    %88 = arith.mulf %87, %86 : vector<48x128xf32>
    %cst_30 = arith.constant 0.00999999977 : f32
    %89 = vector.broadcast %cst_30 : f32 to vector<48x128xf32>
    %90 = arith.mulf %89, %35 : vector<48x128xf32>
    %91 = arith.addf %88, %90 : vector<48x128xf32>
    %92 = vector.broadcast %32 : vector<48x1xf32> to vector<48x128xf32>
    %93 = arith.mulf %92, %91 : vector<48x128xf32>
    %94 = arith.truncf %93 : vector<48x128xf32> to vector<48x128xbf16>
    %cst_31 = arith.constant dense<0.000000e+00> : vector<48x128xf32>
    %95 = tpu.matmul %34, %94, %cst_31 {dimension_numbers = #tpu.dot_dimension_numbers<[1], [0], [0], [1], [0, 0, 1, 1], [], []>} : vector<48x48xbf16>, vector<48x128xbf16>, vector<48x128xf32> -> vector<48x128xf32>
    %96 = vector.broadcast %32 : vector<48x1xf32> to vector<48x128xf32>
    %97 = arith.mulf %96, %95 : vector<48x128xf32>
    %98 = vector.broadcast %33 : vector<48x1xf32> to vector<48x128xf32>
    %99 = arith.mulf %98, %91 : vector<48x128xf32>
    %100 = arith.subf %97, %99 : vector<48x128xf32>
    %cst_32 = arith.constant 9.900000e-01 : f32
    %101 = vector.broadcast %cst_32 : f32 to vector<48x128xf32>
    %102 = arith.mulf %101, %100 : vector<48x128xf32>
    %cst_33 = arith.constant 0.00999999977 : f32
    %103 = vector.broadcast %cst_33 : f32 to vector<48x128xf32>
    %104 = arith.mulf %103, %35 : vector<48x128xf32>
    %105 = arith.addf %102, %104 : vector<48x128xf32>
    %106 = vector.broadcast %32 : vector<48x1xf32> to vector<48x128xf32>
    %107 = arith.mulf %106, %105 : vector<48x128xf32>
    %108 = arith.truncf %107 : vector<48x128xf32> to vector<48x128xbf16>
    %cst_34 = arith.constant dense<0.000000e+00> : vector<48x128xf32>
    %109 = tpu.matmul %34, %108, %cst_34 {dimension_numbers = #tpu.dot_dimension_numbers<[1], [0], [0], [1], [0, 0, 1, 1], [], []>} : vector<48x48xbf16>, vector<48x128xbf16>, vector<48x128xf32> -> vector<48x128xf32>
    %110 = vector.broadcast %32 : vector<48x1xf32> to vector<48x128xf32>
    %111 = arith.mulf %110, %109 : vector<48x128xf32>
    %112 = vector.broadcast %33 : vector<48x1xf32> to vector<48x128xf32>
    %113 = arith.mulf %112, %105 : vector<48x128xf32>
    %114 = arith.subf %111, %113 : vector<48x128xf32>
    %cst_35 = arith.constant 9.900000e-01 : f32
    %115 = vector.broadcast %cst_35 : f32 to vector<48x128xf32>
    %116 = arith.mulf %115, %114 : vector<48x128xf32>
    %cst_36 = arith.constant 0.00999999977 : f32
    %117 = vector.broadcast %cst_36 : f32 to vector<48x128xf32>
    %118 = arith.mulf %117, %35 : vector<48x128xf32>
    %119 = arith.addf %116, %118 : vector<48x128xf32>
    %120 = vector.broadcast %32 : vector<48x1xf32> to vector<48x128xf32>
    %121 = arith.mulf %120, %119 : vector<48x128xf32>
    %122 = arith.truncf %121 : vector<48x128xf32> to vector<48x128xbf16>
    %cst_37 = arith.constant dense<0.000000e+00> : vector<48x128xf32>
    %123 = tpu.matmul %34, %122, %cst_37 {dimension_numbers = #tpu.dot_dimension_numbers<[1], [0], [0], [1], [0, 0, 1, 1], [], []>} : vector<48x48xbf16>, vector<48x128xbf16>, vector<48x128xf32> -> vector<48x128xf32>
    %124 = vector.broadcast %32 : vector<48x1xf32> to vector<48x128xf32>
    %125 = arith.mulf %124, %123 : vector<48x128xf32>
    %126 = vector.broadcast %33 : vector<48x1xf32> to vector<48x128xf32>
    %127 = arith.mulf %126, %119 : vector<48x128xf32>
    %128 = arith.subf %125, %127 : vector<48x128xf32>
    %cst_38 = arith.constant 9.900000e-01 : f32
    %129 = vector.broadcast %cst_38 : f32 to vector<48x128xf32>
    %130 = arith.mulf %129, %128 : vector<48x128xf32>
    %cst_39 = arith.constant 0.00999999977 : f32
    %131 = vector.broadcast %cst_39 : f32 to vector<48x128xf32>
    %132 = arith.mulf %131, %35 : vector<48x128xf32>
    %133 = arith.addf %130, %132 : vector<48x128xf32>
    %134 = vector.broadcast %32 : vector<48x1xf32> to vector<48x128xf32>
    %135 = arith.mulf %134, %133 : vector<48x128xf32>
    %136 = arith.truncf %135 : vector<48x128xf32> to vector<48x128xbf16>
    %cst_40 = arith.constant dense<0.000000e+00> : vector<48x128xf32>
    %137 = tpu.matmul %34, %136, %cst_40 {dimension_numbers = #tpu.dot_dimension_numbers<[1], [0], [0], [1], [0, 0, 1, 1], [], []>} : vector<48x48xbf16>, vector<48x128xbf16>, vector<48x128xf32> -> vector<48x128xf32>
    %138 = vector.broadcast %32 : vector<48x1xf32> to vector<48x128xf32>
    %139 = arith.mulf %138, %137 : vector<48x128xf32>
    %140 = vector.broadcast %33 : vector<48x1xf32> to vector<48x128xf32>
    %141 = arith.mulf %140, %133 : vector<48x128xf32>
    %142 = arith.subf %139, %141 : vector<48x128xf32>
    %cst_41 = arith.constant 9.900000e-01 : f32
    %143 = vector.broadcast %cst_41 : f32 to vector<48x128xf32>
    %144 = arith.mulf %143, %142 : vector<48x128xf32>
    %cst_42 = arith.constant 0.00999999977 : f32
    %145 = vector.broadcast %cst_42 : f32 to vector<48x128xf32>
    %146 = arith.mulf %145, %35 : vector<48x128xf32>
    %147 = arith.addf %144, %146 : vector<48x128xf32>
    %148 = vector.broadcast %32 : vector<48x1xf32> to vector<48x128xf32>
    %149 = arith.mulf %148, %147 : vector<48x128xf32>
    %150 = arith.truncf %149 : vector<48x128xf32> to vector<48x128xbf16>
    %cst_43 = arith.constant dense<0.000000e+00> : vector<48x128xf32>
    %151 = tpu.matmul %34, %150, %cst_43 {dimension_numbers = #tpu.dot_dimension_numbers<[1], [0], [0], [1], [0, 0, 1, 1], [], []>} : vector<48x48xbf16>, vector<48x128xbf16>, vector<48x128xf32> -> vector<48x128xf32>
    %152 = vector.broadcast %32 : vector<48x1xf32> to vector<48x128xf32>
    %153 = arith.mulf %152, %151 : vector<48x128xf32>
    %154 = vector.broadcast %33 : vector<48x1xf32> to vector<48x128xf32>
    %155 = arith.mulf %154, %147 : vector<48x128xf32>
    %156 = arith.subf %153, %155 : vector<48x128xf32>
    %cst_44 = arith.constant 9.900000e-01 : f32
    %157 = vector.broadcast %cst_44 : f32 to vector<48x128xf32>
    %158 = arith.mulf %157, %156 : vector<48x128xf32>
    %cst_45 = arith.constant 0.00999999977 : f32
    %159 = vector.broadcast %cst_45 : f32 to vector<48x128xf32>
    %160 = arith.mulf %159, %35 : vector<48x128xf32>
    %161 = arith.addf %158, %160 : vector<48x128xf32>
    %162 = vector.broadcast %32 : vector<48x1xf32> to vector<48x128xf32>
    %163 = arith.mulf %162, %161 : vector<48x128xf32>
    %164 = arith.truncf %163 : vector<48x128xf32> to vector<48x128xbf16>
    %cst_46 = arith.constant dense<0.000000e+00> : vector<48x128xf32>
    %165 = tpu.matmul %34, %164, %cst_46 {dimension_numbers = #tpu.dot_dimension_numbers<[1], [0], [0], [1], [0, 0, 1, 1], [], []>} : vector<48x48xbf16>, vector<48x128xbf16>, vector<48x128xf32> -> vector<48x128xf32>
    %166 = vector.broadcast %32 : vector<48x1xf32> to vector<48x128xf32>
    %167 = arith.mulf %166, %165 : vector<48x128xf32>
    %168 = vector.broadcast %33 : vector<48x1xf32> to vector<48x128xf32>
    %169 = arith.mulf %168, %161 : vector<48x128xf32>
    %170 = arith.subf %167, %169 : vector<48x128xf32>
    %cst_47 = arith.constant 9.900000e-01 : f32
    %171 = vector.broadcast %cst_47 : f32 to vector<48x128xf32>
    %172 = arith.mulf %171, %170 : vector<48x128xf32>
    %cst_48 = arith.constant 0.00999999977 : f32
    %173 = vector.broadcast %cst_48 : f32 to vector<48x128xf32>
    %174 = arith.mulf %173, %35 : vector<48x128xf32>
    %175 = arith.addf %172, %174 : vector<48x128xf32>
    %176 = vector.extract_strided_slice %175 {offsets = [16, 0], sizes = [32, 128], strides = [1, 1]} : vector<48x128xf32> to vector<32x128xf32>
    %177 = tpu.iota {dimensions = array<i32: 1>} : vector<32x128xi32>
    %c4_i32 = arith.constant 4 : i32
    %178 = vector.broadcast %c4_i32 : i32 to vector<32x128xi32>
    %179 = arith.cmpi slt, %177, %178 : vector<32x128xi32>
    %cst_49 = arith.constant -1.000000e+30 : f32
    %180 = vector.broadcast %cst_49 : f32 to vector<32x128xf32>
    %181 = arith.select %179, %176, %180 : vector<32x128xi1>, vector<32x128xf32>
    %cst_50 = arith.constant dense<0xFF800000> : vector<32xf32>
    %182 = vector.multi_reduction <maximumf>, %181, %cst_50 [1] : vector<32x128xf32> to vector<32xf32>
    %183 = vector.shape_cast %182 : vector<32xf32> to vector<32x1xf32>
    %184 = vector.broadcast %183 : vector<32x1xf32> to vector<32x128xf32>
    %185 = arith.subf %181, %184 : vector<32x128xf32>
    %186 = math.exp %185 : vector<32x128xf32>
    %cst_51 = arith.constant dense<0.000000e+00> : vector<32xf32>
    %187 = vector.multi_reduction <add>, %186, %cst_51 [1] : vector<32x128xf32> to vector<32xf32>
    %188 = vector.shape_cast %187 : vector<32xf32> to vector<32x1xf32>
    %189 = tpu.reciprocal %188 {approx = true} : vector<32x1xf32> -> vector<32x1xf32>
    %190 = vector.broadcast %189 : vector<32x1xf32> to vector<32x128xf32>
    %191 = arith.mulf %186, %190 : vector<32x128xf32>
    %c0_52 = arith.constant 0 : index
    %c0_53 = arith.constant 0 : index
    %192 = vector.load %arg5[%c0_52, %c0_53] : memref<32x128xf32, #tpu.memory_space<vmem>>, vector<32x128xf32>
    tpu.vector_store %arg5[%c0_52, %c0_53], %191 {strides = array<i32>} : memref<32x128xf32, #tpu.memory_space<vmem>>, vector<32x128xf32>,
    return
  }
  func.func @transform_0(%arg0: i32) -> (i32, i32) {
    %c0_i32 = arith.constant 0 : i32
    %c0_i32_0 = arith.constant 0 : i32
    %c0_i32_1 = arith.constant 0 : i32
    return %c0_i32, %c0_i32_0 : i32, i32
  }
  func.func @transform_1(%arg0: i32) -> (i32, i32) {
    %c0_i32 = arith.constant 0 : i32
    %c0_i32_0 = arith.constant 0 : i32
    %c0_i32_1 = arith.constant 0 : i32
    return %c0_i32, %c0_i32_0 : i32, i32
  }
  func.func @transform_2(%arg0: i32) -> (i32, i32) {
    %c0_i32 = arith.constant 0 : i32
    %c0_i32_0 = arith.constant 0 : i32
    %c0_i32_1 = arith.constant 0 : i32
    return %c0_i32, %c0_i32_0 : i32, i32
  }
  func.func @transform_3(%arg0: i32) -> (i32, i32) {
    %c0_i32 = arith.constant 0 : i32
    %c0_i32_0 = arith.constant 0 : i32
    %c0_i32_1 = arith.constant 0 : i32
    return %c0_i32, %c0_i32_0 : i32, i32
  }
  func.func @transform_4(%arg0: i32) -> (i32, i32) {
    %c0_i32 = arith.constant 0 : i32
    %c0_i32_0 = arith.constant 0 : i32
    %c0_i32_1 = arith.constant 0 : i32
    return %c0_i32, %c0_i32_0 : i32, i32
  }
}

</mosaic_0001>

<bundles_post_ra>
// kernel: tpu_custom_call.1
= control target key start
LH: loop header
LB: loop body
LE: loop exit
PB: predicated region body
PF: predicated region fallthrough
CT: control target
= control target key end

     0   :  { %9 = vsyncpa [#allocation3], 0  ;;  %s1783_s0 = inlined_call_operand.vmem [shape: bf16[48,32], index: 0, kind: input, shape index: {}]   ;;  %s1784_s1 = inlined_call_operand.vmem [shape: bf16[32,32], index: 1, kind: input, shape index: {}]   ;;  %s1785_s2 = inlined_call_operand.vmem [shape: bf16[32,32], index: 2, kind: input, shape index: {}]   ;;  %s1786_s3 = inlined_call_operand.hbm [shape: f32[48,128], index: 3, kind: input, shape index: {}]   ;;  %s1787_s4 = inlined_call_operand.hbm [shape: f32[32,128], index: 4, kind: output, shape index: {}]  }
   0x1   :  { %10 = vsyncpa [#allocation4], 0  ;;  %s21_s17 = sshll.u32 %s1786_s3, 4  ;;  %s1299_s18 = smov [#allocation2]   ;;  %s22_s17 = int_to_ptr.hbm [resolvable:$true] %s21_s17 }
   0x2   :  { %s23_s19 = sshll.u32 %s1299_s18, 4  ;;  %s1300_s20 = smov 128   ;;  %s24_s19 = int_to_ptr.vmem [resolvable:$true] %s23_s19 }
   0x3   :  { %s1301_s21 = smov 8  }
   0x4   :  { %29 = dma.hbm_to_vmem [thread:$0]  %s22_s17, 768, %s24_s19, [#allocation3], %s1300_s20, %s1300_s20, %s1301_s21  }
   0x5   :  { %1295 = dma.done.wait [#allocation3], 768  }
   0x6   :  { %1296 = vsyncadd [#allocation3], 4294966528  ;;  %v1197_v0 = vld [vmem:[%s1784_s1 + $0x8] sm:$0xff]  ;;  %v1196_v1 = vld [vmem:[%s1784_s1] sm:$0xff]  ;;  %vm72_vm0 = vcmask 261120   ;;  %v1302_v46 = vmov 1.0  }
   0x7   :  { %88 = vmatpush.bf16.msra.mxu0 %v1197_v0  ;;  %1200 = vmatpush.bf16.msra.mxu1 %v1197_v0  ;;  %v1193_v2 = vld [vmem:[%s1783_s0] sm:$0xff]  ;;  %v1194_v3 = vld [vmem:[%s1783_s0 + $0x8] sm:$0xff]  ;;  %v1195_v4 = vld [vmem:[%s1783_s0 + $0x10] sm:$0xff]  ;;  %vm308_vm1 = vcmask 392192   ;;  %s1303_s0 = smov [#allocation5]   ;;  %s1100_s10 = sshll.u32 %s1787_s4, 4  ;;  %s1101_s10 = int_to_ptr.hbm [resolvable:$true] %s1100_s10 }
   0x8   :  { %v1199_v5 = vld [vmem:[%s1785_s2 + $0x8] sm:$0xff]  ;;  %v1198_v6 = vld [vmem:[%s1785_s2] sm:$0xff]  ;;  %s1098_s2 = sshll.u32 %s1303_s0, 4  ;;  %s1099_s2 = int_to_ptr.vmem [resolvable:$true] %s1098_s2 }
   0xb   :  { %89 = vmatpush.bf16.msra.mxu0 %v1196_v1  ;;  %1201 = vmatpush.bf16.msra.mxu1 %v1196_v1 }
   0xe   :  { %1133 = vmatmul.msk.bf16.vlgmr.msra.gmra.mxu0 %vm72_vm0, %v1193_v2  ;;  %1134 = vmatmul.msk.bf16.vlgmr.msra.gmra.mxu1 %vm72_vm0, %v1194_v3 }
   0xf   :  { %146 = vmatpush.bf16.msrb.mxu1 %v1199_v5 }
  0x13   :  { %147 = vmatpush.bf16.msrb.mxu1 %v1198_v6 }
  0x1e   :  { %1135 = vmatmul.msk.bf16.gmra.mxu1 %vm72_vm0, %v1195_v4 }
  0x8b   :  { %v91_v7 = vpop.f32.mrf.mxu0  ;;  %v96_v8 = vpop.f32.mrf.mxu1 }
  0x8c   :  { %v106_v10 = vmax.f32 %v91_v7, 0.0  ;;  %v108_v14 = vmax.f32 %v96_v8, 0.0 }
  0x93   :  { %v93_v9 = vpop.f32.mrf.mxu0  ;;  %v98_v13 = vpop.f32.mrf.mxu1 }
  0x94   :  { %v107_v11 = vmax.f32 %v93_v9, 0.0  ;;  %v109_v15 = vmax.f32 %v98_v13, 0.0 }
  0x96   :  { %v112_v12 = vpack.c.bf16 %v107_v11, %v106_v10  ;;  %v113_v17 = vpack.c.bf16 %v109_v15, %v108_v14 }
  0x98   :  { %1144 = vmatmul.msk.bf16.vlgmr.msrb.gmra.mxu1 %vm72_vm0, %v112_v12 }
  0x9b   :  { %v101_v16 = vpop.f32.mrf.mxu1 }
  0x9c   :  { %v110_v19 = vmax.f32 %v101_v16, 0.0 }
  0xa3   :  { %v103_v18 = vpop.f32.mrf.mxu1 }
  0xa4   :  { %v111_v20 = vmax.f32 %v103_v18, 0.0 }
  0xa6   :  { %v114_v21 = vpack.c.bf16 %v111_v20, %v110_v19 }
  0xa8   :  { %1145 = vmatmul.msk.bf16.gmra.mxu1 %vm72_vm0, %v113_v17 }
  0xb8   :  { %1146 = vmatmul.msk.bf16.gmra.mxu1 %vm72_vm0, %v114_v21 }
 0x115   :  { %v149_v22 = vpop.f32.mrf.mxu1 }
 0x116   :  { %v200_v23 = vmul.f32 %v149_v22, %v149_v22 }
 0x118   :  { %v206_v24 = vsel %vm72_vm0, %v200_v23, 0.0 }
 0x119   :  { %207 = vadd.xlane.f32.xlu2 %v206_v24 }
 0x11d   :  { %v151_v25 = vpop.f32.mrf.mxu1 }
 0x11e   :  { %v201_v26 = vmul.f32 %v151_v25, %v151_v25  ;;  %v164_v44 = vpack.c.bf16 %v151_v25, %v149_v22 }
 0x120   :  { %v209_v27 = vsel %vm72_vm0, %v201_v26, 0.0  ;;  %v168_v45 = vsel %vm72_vm0, %v164_v44, 0 }
 0x121   :  { %210 = vadd.xlane.f32.xlu2 %v209_v27 }
 0x125   :  { %v154_v28 = vpop.f32.mrf.mxu1 }
 0x126   :  { %v202_v29 = vmul.f32 %v154_v28, %v154_v28 }
 0x128   :  { %v212_v30 = vsel %vm72_vm0, %v202_v29, 0.0 }
 0x129   :  { %213 = vadd.xlane.f32.xlu1 %v212_v30 }
 0x12d   :  { %v156_v31 = vpop.f32.mrf.mxu1 }
 0x12e   :  { %v203_v32 = vmul.f32 %v156_v31, %v156_v31  ;;  %v165_v42 = vpack.c.bf16 %v156_v31, %v154_v28 }
 0x130   :  { %v215_v33 = vsel %vm72_vm0, %v203_v32, 0.0  ;;  %v171_v43 = vsel %vm72_vm0, %v165_v42, 0 }
 0x131   :  { %216 = vadd.xlane.f32.xlu1 %v215_v33 }
 0x135   :  { %v159_v34 = vpop.f32.mrf.mxu1 }
 0x136   :  { %v204_v35 = vmul.f32 %v159_v34, %v159_v34 }
 0x138   :  { %v218_v36 = vsel %vm72_vm0, %v204_v35, 0.0 }
 0x139   :  { %219 = vadd.xlane.f32.xlu0 %v218_v36 }
 0x13d   :  { %v161_v37 = vpop.f32.mrf.mxu1 }
 0x13e   :  { %v205_v38 = vmul.f32 %v161_v37, %v161_v37  ;;  %v166_v39 = vpack.c.bf16 %v161_v37, %v159_v34 }
 0x140   :  { %1150 = vmatpush.xpose.msk.msra.mxu3 %vm72_vm0, %v205_v38  ;;  %v221_v40 = vsel %vm72_vm0, %v205_v38, 0.0  ;;  %v174_v41 = vsel %vm72_vm0, %v166_v39, 0 }
 0x141   :  { %222 = vadd.xlane.f32.xlu0 %v221_v40  ;;  %181 = vmatpush.bf16.xpose.msra.mxu2 %v174_v41 }
 0x144   :  { %1151 = vmatpush.xpose.msk.msra.mxu3 %vm72_vm0, %v204_v35 }
 0x148   :  { %1152 = vmatpush.xpose.msk.msra.mxu3 %vm72_vm0, %v203_v32 }
 0x149   :  { %182 = vmatpush.bf16.xpose.msra.mxu2 %v171_v43 }
 0x14c   :  { %1153 = vmatpush.xpose.msk.msra.mxu3 %vm72_vm0, %v202_v29 }
 0x150   :  { %1154 = vmatpush.xpose.msk.msra.mxu3 %vm72_vm0, %v201_v26 }
 0x151   :  { %183 = vmatpush.bf16.xpose.msra.mxu2 %v168_v45 }
 0x154   :  { %1155 = vmatpush.xpose.msk.msra.mxu3 %vm72_vm0, %v200_v23 }
 0x157   :  { %1156 = vmatmul.msk.f32.vlgmr.msra.gmra.mxu3 %vm72_vm0, %v1302_v46 }
 0x158   :  { %1147 = vmatmul.msk.bf16.vlgmr.msra.gmra.mxu2 %vm72_vm0, %v164_v44 }
 0x168   :  { %1148 = vmatmul.msk.bf16.gmra.mxu2 %vm72_vm0, %v165_v42 }
 0x178   :  { %1149 = vmatmul.msk.bf16.gmra.mxu2 %vm72_vm0, %v166_v39 }
 0x18c   :  { %v208_v47 = vpop.xlane.xlu2 %207 }
 0x194   :  { %v211_v55 = vpop.xlane.xlu2 %210 }
 0x19c   :  { %v214_v62 = vpop.xlane.xlu1 %213 }
 0x1a4   :  { %v217_v9 = vpop.xlane.xlu1 %216 }
 0x1ac   :  { %v220_v18 = vpop.xlane.xlu0 %219 }
 0x1b4   :  { %v223_v29 = vpop.xlane.xlu0 %222 }
 0x1da   :  { %v262_v48 = vpop.f32.mrf.mxu3 }
 0x1db   :  { %v265_v49 = vperm.slane %v262_v48, 0  ;;  %v185_v50 = vpop.f32.mrf.mxu2 }
 0x1dc   :  { %v272_v51 = vmul.f32 2.0, %v185_v50 }
 0x1dd   :  { %v266_v52 = vadd.f32 %v265_v49, %v208_v47  ;;  %v267_v57 = vadd.f32 %v265_v49, %v211_v55  ;;  %v268_v3 = vadd.f32 %v265_v49, %v214_v62  ;;  %v269_v13 = vadd.f32 %v265_v49, %v217_v9 }
 0x1de   :  { %v270_v23 = vadd.f32 %v265_v49, %v220_v18  ;;  %v271_v33 = vadd.f32 %v265_v49, %v223_v29 }
 0x1df   :  { %v278_v53 = vsub.f32 %v266_v52, %v272_v51 }
 0x1e1   :  { %v284_v54 = vmax.f32 %v278_v53, 0.0 }
 0x1e3   :  { %v187_v56 = vpop.f32.mrf.mxu2  ;;  %v290_v59 = vmul.f32 -0.5, %v284_v54 }
 0x1e4   :  { %v273_v58 = vmul.f32 2.0, %v187_v56 }
 0x1e5   :  { %v296_v63 = vmul.f32 1.442695, %v290_v59 }
 0x1e6   :  { %v279_v60 = vsub.f32 %v267_v57, %v273_v58 }
 0x1e7   :  { %1207 = vpow2.f32 %v296_v63 }
 0x1e8   :  { %v285_v61 = vmax.f32 %v279_v60, 0.0 }
 0x1ea   :  { %v291_v0 = vmul.f32 -0.5, %v285_v61 }
 0x1eb   :  { %v190_v1 = vpop.f32.mrf.mxu2 }
 0x1ec   :  { %v298_v2 = vmul.f32 1.442695, %v291_v0  ;;  %v274_v4 = vmul.f32 2.0, %v190_v1 }
 0x1ed   :  { %v1208_v8 = vpop.eup %1207 }
 0x1ee   :  { %1209 = vpow2.f32 %v298_v2  ;;  %v280_v5 = vsub.f32 %v268_v3, %v274_v4  ;;  %v309_v47 = vsel %vm308_vm1, %v1208_v8, 0.0 }
 0x1f0   :  { %v286_v6 = vmax.f32 %v280_v5, 0.0 }
 0x1f2   :  { %v292_v7 = vmul.f32 -0.5, %v286_v6 }
 0x1f3   :  { %v192_v10 = vpop.f32.mrf.mxu2 }
 0x1f4   :  { %v1210_v11 = vpop.eup %1209  ;;  %v300_v12 = vmul.f32 1.442695, %v292_v7  ;;  %v275_v14 = vmul.f32 2.0, %v192_v10 }
 0x1f5   :  { %v1381_v15 = vpack.c.bf16 %v1210_v11, %v1208_v8  ;;  %v312_v36 = vsel %vm308_vm1, %v1210_v11, 0.0 }
 0x1f6   :  { %1211 = vpow2.f32 %v300_v12  ;;  %v281_v16 = vsub.f32 %v269_v13, %v275_v14 }
 0x1f8   :  { %v287_v17 = vmax.f32 %v281_v16, 0.0 }
 0x1fa   :  { %v293_v19 = vmul.f32 -0.5, %v287_v17 }
 0x1fb   :  { %v195_v20 = vpop.f32.mrf.mxu2 }
 0x1fc   :  { %v1212_v21 = vpop.eup %1211  ;;  %v302_v22 = vmul.f32 1.442695, %v293_v19  ;;  %v276_v24 = vmul.f32 2.0, %v195_v20 }
 0x1fd   :  { %v315_v25 = vsel %vm308_vm1, %v1212_v21, 0.0 }
 0x1fe   :  { %1213 = vpow2.f32 %v302_v22  ;;  %v282_v26 = vsub.f32 %v270_v23, %v276_v24  ;;  %316 = vadd.xlane.f32.xlu2 %v315_v25 }
 0x200   :  { %v288_v27 = vmax.f32 %v282_v26, 0.0 }
 0x202   :  { %v294_v28 = vmul.f32 -0.5, %v288_v27 }
 0x203   :  { %v197_v30 = vpop.f32.mrf.mxu2 }
 0x204   :  { %v1214_v31 = vpop.eup %1213  ;;  %v304_v32 = vmul.f32 1.442695, %v294_v28  ;;  %v277_v34 = vmul.f32 2.0, %v197_v30 }
 0x205   :  { %v1384_v35 = vpack.c.bf16 %v1214_v31, %v1212_v21  ;;  %v318_v45 = vsel %vm308_vm1, %v1214_v31, 0.0 }
 0x206   :  { %1215 = vpow2.f32 %v304_v32  ;;  %v283_v37 = vsub.f32 %v271_v33, %v277_v34  ;;  %313 = vadd.xlane.f32.xlu2 %v312_v36  ;;  %v1413_v36 = vld [vmem:[#allocation2 + $0x20] sm:$0xff] }
 0x208   :  { %v289_v38 = vmax.f32 %v283_v37, 0.0  ;;  %v1415_v37 = vld [vmem:[#allocation2 + $0x28] sm:$0xff] }
 0x20a   :  { %v295_v39 = vmul.f32 -0.5, %v289_v38 }
 0x20c   :  { %v1216_v40 = vpop.eup %1215  ;;  %v306_v41 = vmul.f32 1.442695, %v295_v39 }
 0x20d   :  { %v321_v42 = vsel %vm308_vm1, %v1216_v40, 0.0 }
 0x20e   :  { %1217 = vpow2.f32 %v306_v41  ;;  %322 = vadd.xlane.f32.xlu0 %v321_v42  ;;  %v411_v41 = vld [vmem:[#allocation2 + $0x18] sm:$0xff] }
 0x214   :  { %v1218_v43 = vpop.eup %1217 }
 0x215   :  { %v1388_v44 = vpack.c.bf16 %v1218_v43, %v1216_v40  ;;  %v324_v46 = vsel %vm308_vm1, %v1218_v43, 0.0 }
 0x216   :  { %319 = vadd.xlane.f32.xlu0 %v318_v45  ;;  %325 = vadd.xlane.f32.xlu1 %v324_v46 }
 0x21e   :  { %310 = vadd.xlane.f32.xlu1 %v309_v47 }
 0x271   :  { %v317_v48 = vpop.xlane.xlu2 %316 }
 0x272   :  { %v1159_v49 = vadd.f32 -1.0, %v317_v48  ;;  %v410_v48 = vld [vmem:[#allocation2 + $0x10] sm:$0xff] }
 0x274   :  { %v1393_v52 = vmax.f32 %v1159_v49, 1e-06 }
 0x276   :  { %1219 = vrsqrt.f32 %v1393_v52  ;;  %vm365_vm12 = vweird.f32 %v1393_v52 }
 0x279   :  { %v314_v50 = vpop.xlane.xlu2 %313 }
 0x27a   :  { %v1158_v51 = vadd.f32 -1.0, %v314_v50 }
 0x27c   :  { %v1395_v55 = vmax.f32 %v1158_v51, 1e-06  ;;  %v1399_v61 = vpop.eup %1219 }
 0x27d   :  { %v360_v3 = vmul.f32 %v1399_v61, %v1393_v52  ;;  %vm366_vm4 = vweird.f32 %v1399_v61 }
 0x27e   :  { %vm367_vm14 = vmor %vm365_vm12, %vm366_vm4  ;;  %vm355_vm15 = vweird.f32 %v1395_v55 }
 0x27f   :  { %v361_v7 = vmul.f32 %v1399_v61, %v360_v3 }
 0x281   :  { %v323_v53 = vpop.xlane.xlu0 %322  ;;  %v362_v16 = vmul.f32 0.5, %v361_v7 }
 0x282   :  { %v1161_v54 = vadd.f32 -1.0, %v323_v53 }
 0x283   :  { %v363_v23 = vsub.f32 1.5, %v362_v16 }
 0x284   :  { %v337_v56 = vmax.f32 %v1161_v54, 1e-06 }
 0x285   :  { %v364_v32 = vmul.f32 %v1399_v61, %v363_v23 }
 0x286   :  { %1221 = vrsqrt.f32 %v337_v56  ;;  %vm385_vm5 = vweird.f32 %v337_v56 }
 0x287   :  { %1223 = vrsqrt.f32 %v1395_v55  ;;  %v1431_v47 = vsel %vm367_vm14, %v1399_v61, %v364_v32 }
 0x288   :  { %v416_v54 = vmul.f32 %v410_v48, %v1431_v47 }
 0x289   :  { %v320_v57 = vpop.xlane.xlu0 %319  ;;  %v326_v58 = vpop.xlane.xlu1 %325 }
 0x28a   :  { %v1160_v59 = vadd.f32 -1.0, %v320_v57  ;;  %v1162_v60 = vadd.f32 -1.0, %v326_v58  ;;  %v409_v57 = vld [vmem:[#allocation2 + $0x8] sm:$0xff] }
 0x28c   :  { %v1222_v62 = vpop.eup %1221  ;;  %v336_v63 = vmax.f32 %v1160_v59, 1e-06  ;;  %v338_v0 = vmax.f32 %v1162_v60, 1e-06 }
 0x28d   :  { %v380_v1 = vmul.f32 %v1222_v62, %v337_v56  ;;  %v1401_v2 = vpop.eup %1223  ;;  %vm386_vm2 = vweird.f32 %v1222_v62  ;;  %v408_v56 = vld [vmem:[#allocation2] sm:$0xff] }
 0x28e   :  { %1225 = vrsqrt.f32 %v336_v63  ;;  %v350_v5 = vmul.f32 %v1401_v2, %v1395_v55  ;;  %vm387_vm7 = vmor %vm385_vm5, %vm386_vm2  ;;  %vm375_vm8 = vweird.f32 %v336_v63  ;;  %vm395_vm10 = vweird.f32 %v338_v0 }
 0x28f   :  { %v381_v4 = vmul.f32 %v1222_v62, %v380_v1  ;;  %1227 = vrsqrt.f32 %v338_v0  ;;  %vm356_vm13 = vweird.f32 %v1401_v2 }
 0x290   :  { %v351_v13 = vmul.f32 %v1401_v2, %v350_v5  ;;  %vm357_vm2 = vmor %vm355_vm15, %vm356_vm13  ;;  %v1461_v5 = vmul.f32 0.01, %v408_v56 }
 0x291   :  { %v311_v6 = vpop.xlane.xlu1 %310  ;;  %v382_v8 = vmul.f32 0.5, %v381_v4 }
 0x292   :  { %v1157_v9 = vadd.f32 -1.0, %v311_v6  ;;  %v352_v21 = vmul.f32 0.5, %v351_v13 }
 0x293   :  { %v383_v17 = vsub.f32 1.5, %v382_v8 }
 0x294   :  { %v1226_v10 = vpop.eup %1225  ;;  %v333_v11 = vmax.f32 %v1157_v9, 1e-06  ;;  %v353_v29 = vsub.f32 1.5, %v352_v21  ;;  %v1465_v9 = vmul.f32 0.01, %v409_v57 }
 0x295   :  { %v1228_v12 = vpop.eup %1227  ;;  %v370_v14 = vmul.f32 %v1226_v10, %v336_v63  ;;  %v384_v24 = vmul.f32 %v1222_v62, %v383_v17  ;;  %vm376_vm3 = vweird.f32 %v1226_v10 }
 0x296   :  { %v390_v18 = vmul.f32 %v1228_v12, %v338_v0  ;;  %1229 = vrsqrt.f32 %v333_v11  ;;  %vm396_vm6 = vweird.f32 %v1228_v12  ;;  %vm377_vm9 = vmor %vm375_vm8, %vm376_vm3  ;;  %v354_v42 = vmul.f32 %v1401_v2, %v353_v29 }
 0x297   :  { %v371_v19 = vmul.f32 %v1226_v10, %v370_v14  ;;  %v1411_v33 = vsel %vm387_vm7, %v1222_v62, %v384_v24  ;;  %vm397_vm11 = vmor %vm395_vm10, %vm396_vm6  ;;  %vm345_vm3 = vweird.f32 %v333_v11  ;;  %v1471_v14 = vmul.f32 %v1431_v47, %v1431_v47 }
 0x298   :  { %v391_v20 = vmul.f32 %v1228_v12, %v390_v18  ;;  %v418_v45 = vmul.f32 %v1413_v36, %v1411_v33  ;;  %v1438_v52 = vsel %vm357_vm2, %v1401_v2, %v354_v42  ;;  %v1485_v29 = vmul.f32 0.01, %v411_v41 }
 0x299   :  { %v372_v22 = vmul.f32 0.5, %v371_v19  ;;  %v415_v60 = vmul.f32 %v409_v57, %v1438_v52  ;;  %v1459_v3 = vmul.f32 %v1438_v52, %v1438_v52 }
 0x29a   :  { %v392_v25 = vmul.f32 0.5, %v391_v20  ;;  %v464_v20 = vmul.f32 %v410_v48, %v1471_v14 }
 0x29b   :  { %v373_v26 = vsub.f32 1.5, %v372_v22  ;;  %v463_v8 = vmul.f32 %v409_v57, %v1459_v3 }
 0x29c   :  { %v1230_v27 = vpop.eup %1229  ;;  %v393_v28 = vsub.f32 1.5, %v392_v25  ;;  %v1481_v25 = vmul.f32 0.01, %v410_v48 }
 0x29d   :  { %v374_v30 = vmul.f32 %v1226_v10, %v373_v26  ;;  %v340_v31 = vmul.f32 %v1230_v27, %v333_v11  ;;  %vm346_vm0 = vweird.f32 %v1230_v27 }
 0x29e   :  { %v394_v34 = vmul.f32 %v1228_v12, %v393_v28  ;;  %vm347_vm4 = vmor %vm345_vm3, %vm346_vm0 }
 0x29f   :  { %v341_v38 = vmul.f32 %v1230_v27, %v340_v31  ;;  %v1419_v39 = vsel %vm377_vm9, %v1226_v10, %v374_v30 }
 0x2a0   :  { %v1421_v40 = vsel %vm397_vm11, %v1228_v12, %v394_v34  ;;  %v417_v51 = vmul.f32 %v411_v41, %v1419_v39  ;;  %v1479_v23 = vmul.f32 %v1419_v39, %v1419_v39 }
 0x2a1   :  { %v342_v43 = vmul.f32 0.5, %v341_v38  ;;  %v419_v46 = vmul.f32 %v1415_v37, %v1421_v40  ;;  %v1491_v38 = vmul.f32 %v1411_v33, %v1411_v33 }
 0x2a2   :  { %v421_v58 = vpack.c.bf16 %v417_v51, %v416_v54  ;;  %v465_v28 = vmul.f32 %v411_v41, %v1479_v23 }
 0x2a3   :  { %v343_v49 = vsub.f32 1.5, %v342_v43  ;;  %v422_v50 = vpack.c.bf16 %v419_v46, %v418_v45  ;;  %v466_v41 = vmul.f32 %v1413_v36, %v1491_v38 }
 0x2a5   :  { %v344_v53 = vmul.f32 %v1230_v27, %v343_v49  ;;  %437 = vmatpush.bf16.msrb.mxu3 %v422_v50  ;;  %v1500_v50 = vmul.f32 %v1421_v40, %v1421_v40 }
 0x2a7   :  { %v1441_v55 = vsel %vm347_vm4, %v1230_v27, %v344_v53  ;;  %v1503_v53 = vmul.f32 0.01, %v1413_v36  ;;  %v467_v57 = vmul.f32 %v1415_v37, %v1500_v50 }
 0x2a8   :  { %v414_v59 = vmul.f32 %v408_v56, %v1441_v55  ;;  %v1453_v62 = vmul.f32 %v1441_v55, %v1441_v55 }
 0x2a9   :  { %438 = vmatpush.bf16.msrb.mxu3 %v421_v58  ;;  %v1509_v58 = vmul.f32 0.01, %v1415_v37 }
 0x2aa   :  { %v420_v61 = vpack.c.bf16 %v415_v60, %v414_v59  ;;  %v462_v1 = vmul.f32 %v408_v56, %v1453_v62 }
 0x2ad   :  { %439 = vmatpush.bf16.msrb.mxu3 %v420_v61 }
 0x2b0   :  { %1163 = vmatmul.msk.bf16.vlgmr.msrb.gmra.mxu3 %vm308_vm1, %v1381_v15 }
 0x2c0   :  { %1164 = vmatmul.msk.bf16.gmra.mxu3 %vm308_vm1, %v1384_v35 }
 0x2d0   :  { %1165 = vmatmul.msk.bf16.gmra.mxu3 %vm308_vm1, %v1388_v44 }
 0x333   :  { %v441_v63 = vpop.f32.mrf.mxu3 }
 0x334   :  { %v456_v0 = vmul.f32 %v441_v63, %v1441_v55 }
 0x336   :  { %v468_v2 = vsub.f32 %v456_v0, %v462_v1 }
 0x338   :  { %v474_v6 = vmul.f32 0.99, %v468_v2 }
 0x33a   :  { %v486_v11 = vadd.f32 %v1461_v5, %v474_v6 }
 0x33b   :  { %v443_v4 = vpop.f32.mrf.mxu3 }
 0x33c   :  { %v457_v7 = vmul.f32 %v443_v4, %v1438_v52  ;;  %v492_v18 = vmul.f32 %v486_v11, %v1441_v55  ;;  %v531_v4 = vmul.f32 %v486_v11, %v1453_v62 }
 0x33e   :  { %v469_v10 = vsub.f32 %v457_v7, %v463_v8 }
 0x340   :  { %v475_v12 = vmul.f32 0.99, %v469_v10 }
 0x342   :  { %v487_v13 = vadd.f32 %v1465_v9, %v475_v12 }
 0x343   :  { %v446_v16 = vpop.f32.mrf.mxu3 }
 0x344   :  { %v458_v17 = vmul.f32 %v446_v16, %v1431_v47  ;;  %v493_v19 = vmul.f32 %v487_v13, %v1438_v52  ;;  %v532_v12 = vmul.f32 %v487_v13, %v1459_v3 }
 0x346   :  { %v498_v21 = vpack.c.bf16 %v493_v19, %v492_v18  ;;  %v470_v22 = vsub.f32 %v458_v17, %v464_v20 }
 0x348   :  { %v476_v26 = vmul.f32 0.99, %v470_v22 }
 0x34a   :  { %v488_v31 = vadd.f32 %v1481_v25, %v476_v26 }
 0x34b   :  { %v448_v24 = vpop.f32.mrf.mxu3 }
 0x34c   :  { %v459_v27 = vmul.f32 %v448_v24, %v1419_v39  ;;  %v494_v45 = vmul.f32 %v488_v31, %v1431_v47  ;;  %v533_v24 = vmul.f32 %v488_v31, %v1471_v14 }
 0x34e   :  { %v471_v30 = vsub.f32 %v459_v27, %v465_v28 }
 0x350   :  { %v477_v32 = vmul.f32 0.99, %v471_v30 }
 0x352   :  { %v489_v34 = vadd.f32 %v1485_v29, %v477_v32 }
 0x353   :  { %v451_v42 = vpop.f32.mrf.mxu3 }
 0x354   :  { %v460_v43 = vmul.f32 %v451_v42, %v1411_v33  ;;  %v495_v46 = vmul.f32 %v489_v34, %v1419_v39  ;;  %v534_v32 = vmul.f32 %v489_v34, %v1479_v23 }
 0x356   :  { %v499_v48 = vpack.c.bf16 %v495_v46, %v494_v45  ;;  %v472_v49 = vsub.f32 %v460_v43, %v466_v41 }
 0x358   :  { %v478_v54 = vmul.f32 0.99, %v472_v49 }
 0x35a   :  { %v490_v60 = vadd.f32 %v1503_v53, %v478_v54 }
 0x35b   :  { %v453_v51 = vpop.f32.mrf.mxu3 }
 0x35c   :  { %v461_v56 = vmul.f32 %v453_v51, %v1421_v40  ;;  %v496_v0 = vmul.f32 %v490_v60, %v1411_v33  ;;  %v535_v51 = vmul.f32 %v490_v60, %v1491_v38 }
 0x35e   :  { %v473_v59 = vsub.f32 %v461_v56, %v467_v57 }
 0x360   :  { %v479_v61 = vmul.f32 0.99, %v473_v59 }
 0x362   :  { %v491_v63 = vadd.f32 %v1509_v58, %v479_v61 }
 0x364   :  { %v497_v36 = vmul.f32 %v491_v63, %v1421_v40  ;;  %v536_v61 = vmul.f32 %v491_v63, %v1500_v50 }
 0x366   :  { %v500_v1 = vpack.c.bf16 %v497_v36, %v496_v0 }
 0x368   :  { %506 = vmatpush.bf16.msrb.mxu0 %v500_v1 }
 0x36c   :  { %507 = vmatpush.bf16.msrb.mxu0 %v499_v48 }
 0x370   :  { %508 = vmatpush.bf16.msrb.mxu0 %v498_v21 }
 0x373   :  { %1166 = vmatmul.msk.bf16.vlgmr.msrb.gmra.mxu0 %vm308_vm1, %v1381_v15 }
 0x383   :  { %1167 = vmatmul.msk.bf16.gmra.mxu0 %vm308_vm1, %v1384_v35 }
 0x393   :  { %1168 = vmatmul.msk.bf16.gmra.mxu0 %vm308_vm1, %v1388_v44 }
 0x3f0   :  { %v510_v37 = vpop.f32.mrf.mxu0 }
 0x3f1   :  { %v525_v2 = vmul.f32 %v510_v37, %v1441_v55 }
 0x3f3   :  { %v537_v6 = vsub.f32 %v525_v2, %v531_v4 }
 0x3f5   :  { %v543_v8 = vmul.f32 0.99, %v537_v6 }
 0x3f7   :  { %v549_v17 = vadd.f32 %v543_v8, %v1461_v5 }
 0x3f8   :  { %v512_v7 = vpop.f32.mrf.mxu0 }
 0x3f9   :  { %v526_v10 = vmul.f32 %v512_v7, %v1438_v52  ;;  %v555_v22 = vmul.f32 %v549_v17, %v1441_v55  ;;  %v594_v7 = vmul.f32 %v549_v17, %v1453_v62 }
 0x3fb   :  { %v538_v16 = vsub.f32 %v526_v10, %v532_v12 }
 0x3fd   :  { %v544_v18 = vmul.f32 0.99, %v538_v16 }
 0x3ff   :  { %v550_v19 = vadd.f32 %v544_v18, %v1465_v9 }
 0x400   :  { %v515_v20 = vpop.f32.mrf.mxu0 }
 0x401   :  { %v527_v21 = vmul.f32 %v515_v20, %v1431_v47  ;;  %v556_v11 = vmul.f32 %v550_v19, %v1438_v52  ;;  %v595_v18 = vmul.f32 %v550_v19, %v1459_v3 }
 0x403   :  { %v561_v26 = vpack.c.bf16 %v556_v11, %v555_v22  ;;  %v539_v27 = vsub.f32 %v527_v21, %v533_v24 }
 0x405   :  { %v545_v30 = vmul.f32 0.99, %v539_v27 }
 0x407   :  { %v551_v43 = vadd.f32 %v545_v30, %v1481_v25 }
 0x408   :  { %v517_v28 = vpop.f32.mrf.mxu0 }
 0x409   :  { %v528_v13 = vmul.f32 %v517_v28, %v1419_v39  ;;  %v557_v49 = vmul.f32 %v551_v43, %v1431_v47  ;;  %v596_v28 = vmul.f32 %v551_v43, %v1471_v14 }
 0x40b   :  { %v540_v42 = vsub.f32 %v528_v13, %v534_v32 }
 0x40d   :  { %v546_v45 = vmul.f32 0.99, %v540_v42 }
 0x40f   :  { %v552_v46 = vadd.f32 %v546_v45, %v1485_v29 }
 0x410   :  { %v520_v41 = vpop.f32.mrf.mxu0 }
 0x411   :  { %v529_v48 = vmul.f32 %v520_v41, %v1411_v33  ;;  %v558_v31 = vmul.f32 %v552_v46, %v1419_v39  ;;  %v597_v45 = vmul.f32 %v552_v46, %v1479_v23 }
 0x413   :  { %v562_v54 = vpack.c.bf16 %v558_v31, %v557_v49  ;;  %v541_v56 = vsub.f32 %v529_v48, %v535_v51 }
 0x415   :  { %v547_v59 = vmul.f32 0.99, %v541_v56 }
 0x417   :  { %v553_v36 = vadd.f32 %v547_v59, %v1503_v53 }
 0x418   :  { %v522_v57 = vpop.f32.mrf.mxu0 }
 0x419   :  { %v530_v34 = vmul.f32 %v522_v57, %v1421_v40  ;;  %v559_v2 = vmul.f32 %v553_v36, %v1411_v33  ;;  %v598_v57 = vmul.f32 %v553_v36, %v1491_v38 }
 0x41b   :  { %v542_v0 = vsub.f32 %v530_v34, %v536_v61 }
 0x41d   :  { %v548_v1 = vmul.f32 0.99, %v542_v0 }
 0x41f   :  { %v554_v37 = vadd.f32 %v548_v1, %v1509_v58 }
 0x421   :  { %v560_v4 = vmul.f32 %v554_v37, %v1421_v40  ;;  %v599_v1 = vmul.f32 %v554_v37, %v1500_v50 }
 0x423   :  { %v563_v6 = vpack.c.bf16 %v560_v4, %v559_v2 }
 0x425   :  { %569 = vmatpush.bf16.msra.mxu1 %v563_v6 }
 0x429   :  { %570 = vmatpush.bf16.msra.mxu1 %v562_v54 }
 0x42d   :  { %571 = vmatpush.bf16.msra.mxu1 %v561_v26 }
 0x430   :  { %1169 = vmatmul.msk.bf16.vlgmr.msra.gmra.mxu1 %vm308_vm1, %v1381_v15 }
 0x440   :  { %1170 = vmatmul.msk.bf16.gmra.mxu1 %vm308_vm1, %v1384_v35 }
 0x450   :  { %1171 = vmatmul.msk.bf16.gmra.mxu1 %vm308_vm1, %v1388_v44 }
 0x4ad   :  { %v573_v60 = vpop.f32.mrf.mxu1 }
 0x4ae   :  { %v588_v63 = vmul.f32 %v573_v60, %v1441_v55 }
 0x4b0   :  { %v600_v8 = vsub.f32 %v588_v63, %v594_v7 }
 0x4b2   :  { %v606_v12 = vmul.f32 0.99, %v600_v8 }
 0x4b4   :  { %v612_v21 = vadd.f32 %v606_v12, %v1461_v5 }
 0x4b5   :  { %v575_v10 = vpop.f32.mrf.mxu1 }
 0x4b6   :  { %v589_v16 = vmul.f32 %v575_v10, %v1438_v52  ;;  %v618_v27 = vmul.f32 %v612_v21, %v1441_v55  ;;  %v657_v10 = vmul.f32 %v612_v21, %v1453_v62 }
 0x4b8   :  { %v601_v20 = vsub.f32 %v589_v16, %v595_v18 }
 0x4ba   :  { %v607_v22 = vmul.f32 0.99, %v601_v20 }
 0x4bc   :  { %v613_v11 = vadd.f32 %v607_v22, %v1465_v9 }
 0x4bd   :  { %v578_v24 = vpop.f32.mrf.mxu1 }
 0x4be   :  { %v590_v26 = vmul.f32 %v578_v24, %v1431_v47  ;;  %v619_v17 = vmul.f32 %v613_v11, %v1438_v52  ;;  %v658_v22 = vmul.f32 %v613_v11, %v1459_v3 }
 0x4c0   :  { %v624_v30 = vpack.c.bf16 %v619_v17, %v618_v27  ;;  %v602_v13 = vsub.f32 %v590_v26, %v596_v28 }
 0x4c2   :  { %v608_v42 = vmul.f32 0.99, %v602_v13 }
 0x4c4   :  { %v614_v48 = vadd.f32 %v608_v42, %v1481_v25 }
 0x4c5   :  { %v580_v32 = vpop.f32.mrf.mxu1 }
 0x4c6   :  { %v591_v19 = vmul.f32 %v580_v32, %v1419_v39  ;;  %v620_v56 = vmul.f32 %v614_v48, %v1431_v47  ;;  %v659_v32 = vmul.f32 %v614_v48, %v1471_v14 }
 0x4c8   :  { %v603_v41 = vsub.f32 %v591_v19, %v597_v45 }
 0x4ca   :  { %v609_v49 = vmul.f32 0.99, %v603_v41 }
 0x4cc   :  { %v615_v31 = vadd.f32 %v609_v49, %v1485_v29 }
 0x4cd   :  { %v583_v51 = vpop.f32.mrf.mxu1 }
 0x4ce   :  { %v592_v54 = vmul.f32 %v583_v51, %v1411_v33  ;;  %v621_v43 = vmul.f32 %v615_v31, %v1419_v39  ;;  %v660_v49 = vmul.f32 %v615_v31, %v1479_v23 }
 0x4d0   :  { %v625_v59 = vpack.c.bf16 %v621_v43, %v620_v56  ;;  %v604_v34 = vsub.f32 %v592_v54, %v598_v57 }
 0x4d2   :  { %v610_v0 = vmul.f32 0.99, %v604_v34 }
 0x4d4   :  { %v616_v4 = vadd.f32 %v610_v0, %v1503_v53 }
 0x4d5   :  { %v585_v61 = vpop.f32.mrf.mxu1 }
 0x4d6   :  { %v593_v46 = vmul.f32 %v585_v61, %v1421_v40  ;;  %v622_v63 = vmul.f32 %v616_v4, %v1411_v33  ;;  %v661_v61 = vmul.f32 %v616_v4, %v1491_v38 }
 0x4d8   :  { %v605_v2 = vsub.f32 %v593_v46, %v599_v1 }
 0x4da   :  { %v611_v6 = vmul.f32 0.99, %v605_v2 }
 0x4dc   :  { %v617_v60 = vadd.f32 %v611_v6, %v1509_v58 }
 0x4de   :  { %v623_v7 = vmul.f32 %v617_v60, %v1421_v40  ;;  %v662_v6 = vmul.f32 %v617_v60, %v1500_v50 }
 0x4e0   :  { %v626_v8 = vpack.c.bf16 %v623_v7, %v622_v63 }
 0x4e2   :  { %632 = vmatpush.bf16.msrb.mxu2 %v626_v8 }
 0x4e6   :  { %633 = vmatpush.bf16.msrb.mxu2 %v625_v59 }
 0x4ea   :  { %634 = vmatpush.bf16.msrb.mxu2 %v624_v30 }
 0x4ed   :  { %1172 = vmatmul.msk.bf16.vlgmr.msrb.gmra.mxu2 %vm308_vm1, %v1381_v15 }
 0x4fd   :  { %1173 = vmatmul.msk.bf16.gmra.mxu2 %vm308_vm1, %v1384_v35 }
 0x50d   :  { %1174 = vmatmul.msk.bf16.gmra.mxu2 %vm308_vm1, %v1388_v44 }
 0x570   :  { %v636_v36 = vpop.f32.mrf.mxu2 }
 0x571   :  { %v651_v37 = vmul.f32 %v636_v36, %v1441_v55 }
 0x573   :  { %v663_v12 = vsub.f32 %v651_v37, %v657_v10 }
 0x575   :  { %v669_v18 = vmul.f32 0.99, %v663_v12 }
 0x577   :  { %v675_v26 = vadd.f32 %v669_v18, %v1461_v5 }
 0x578   :  { %v638_v16 = vpop.f32.mrf.mxu2 }
 0x579   :  { %v652_v20 = vmul.f32 %v638_v16, %v1438_v52  ;;  %v681_v13 = vmul.f32 %v675_v26, %v1441_v55  ;;  %v720_v16 = vmul.f32 %v675_v26, %v1453_v62 }
 0x57b   :  { %v664_v24 = vsub.f32 %v652_v20, %v658_v22 }
 0x57d   :  { %v670_v27 = vmul.f32 0.99, %v664_v24 }
 0x57f   :  { %v676_v17 = vadd.f32 %v670_v27, %v1465_v9 }
 0x580   :  { %v641_v28 = vpop.f32.mrf.mxu2 }
 0x581   :  { %v653_v30 = vmul.f32 %v641_v28, %v1431_v47  ;;  %v682_v21 = vmul.f32 %v676_v17, %v1438_v52  ;;  %v721_v27 = vmul.f32 %v676_v17, %v1459_v3 }
 0x583   :  { %v687_v42 = vpack.c.bf16 %v682_v21, %v681_v13  ;;  %v665_v19 = vsub.f32 %v653_v30, %v659_v32 }
 0x585   :  { %v671_v41 = vmul.f32 0.99, %v665_v19 }
 0x587   :  { %v677_v54 = vadd.f32 %v671_v41, %v1481_v25 }
 0x588   :  { %v643_v45 = vpop.f32.mrf.mxu2 }
 0x589   :  { %v654_v11 = vmul.f32 %v643_v45, %v1419_v39  ;;  %v683_v34 = vmul.f32 %v677_v54, %v1431_v47  ;;  %v722_v45 = vmul.f32 %v677_v54, %v1471_v14 }
 0x58b   :  { %v666_v51 = vsub.f32 %v654_v11, %v660_v49 }
 0x58d   :  { %v672_v56 = vmul.f32 0.99, %v666_v51 }
 0x58f   :  { %v678_v43 = vadd.f32 %v672_v56, %v1485_v29 }
 0x590   :  { %v646_v57 = vpop.f32.mrf.mxu2 }
 0x591   :  { %v655_v59 = vmul.f32 %v646_v57, %v1411_v33  ;;  %v684_v48 = vmul.f32 %v678_v43, %v1419_v39  ;;  %v723_v56 = vmul.f32 %v678_v43, %v1479_v23 }
 0x593   :  { %v688_v0 = vpack.c.bf16 %v684_v48, %v683_v34  ;;  %v667_v46 = vsub.f32 %v655_v59, %v661_v61 }
 0x595   :  { %v673_v2 = vmul.f32 0.99, %v667_v46 }
 0x597   :  { %v679_v7 = vadd.f32 %v673_v2, %v1503_v53 }
 0x598   :  { %v648_v1 = vpop.f32.mrf.mxu2 }
 0x599   :  { %v656_v31 = vmul.f32 %v648_v1, %v1421_v40  ;;  %v685_v37 = vmul.f32 %v679_v7, %v1411_v33  ;;  %v724_v1 = vmul.f32 %v679_v7, %v1491_v38 }
 0x59b   :  { %v668_v63 = vsub.f32 %v656_v31, %v662_v6 }
 0x59d   :  { %v674_v8 = vmul.f32 0.99, %v668_v63 }
 0x59f   :  { %v680_v36 = vadd.f32 %v674_v8, %v1509_v58 }
 0x5a1   :  { %v686_v10 = vmul.f32 %v680_v36, %v1421_v40  ;;  %v725_v8 = vmul.f32 %v680_v36, %v1500_v50 }
 0x5a3   :  { %v689_v12 = vpack.c.bf16 %v686_v10, %v685_v37 }
 0x5a5   :  { %695 = vmatpush.bf16.msra.mxu3 %v689_v12 }
 0x5a9   :  { %696 = vmatpush.bf16.msra.mxu3 %v688_v0 }
 0x5ad   :  { %697 = vmatpush.bf16.msra.mxu3 %v687_v42 }
 0x5b0   :  { %1175 = vmatmul.msk.bf16.vlgmr.msra.gmra.mxu3 %vm308_vm1, %v1381_v15 }
 0x5c0   :  { %1176 = vmatmul.msk.bf16.gmra.mxu3 %vm308_vm1, %v1384_v35 }
 0x5d0   :  { %1177 = vmatmul.msk.bf16.gmra.mxu3 %vm308_vm1, %v1388_v44 }
 0x633   :  { %v699_v4 = vpop.f32.mrf.mxu3 }
 0x634   :  { %v714_v60 = vmul.f32 %v699_v4, %v1441_v55 }
 0x636   :  { %v726_v18 = vsub.f32 %v714_v60, %v720_v16 }
 0x638   :  { %v732_v22 = vmul.f32 0.99, %v726_v18 }
 0x63a   :  { %v738_v30 = vadd.f32 %v732_v22, %v1461_v5 }
 0x63b   :  { %v701_v20 = vpop.f32.mrf.mxu3 }
 0x63c   :  { %v715_v24 = vmul.f32 %v701_v20, %v1438_v52  ;;  %v744_v19 = vmul.f32 %v738_v30, %v1441_v55  ;;  %v783_v20 = vmul.f32 %v738_v30, %v1453_v62 }
 0x63e   :  { %v727_v28 = vsub.f32 %v715_v24, %v721_v27 }
 0x640   :  { %v733_v13 = vmul.f32 0.99, %v727_v28 }
 0x642   :  { %v739_v21 = vadd.f32 %v733_v13, %v1465_v9 }
 0x643   :  { %v704_v32 = vpop.f32.mrf.mxu3 }
 0x644   :  { %v716_v42 = vmul.f32 %v704_v32, %v1431_v47  ;;  %v745_v26 = vmul.f32 %v739_v21, %v1438_v52  ;;  %v784_v13 = vmul.f32 %v739_v21, %v1459_v3 }
 0x646   :  { %v750_v41 = vpack.c.bf16 %v745_v26, %v744_v19  ;;  %v728_v11 = vsub.f32 %v716_v42, %v722_v45 }
 0x648   :  { %v734_v51 = vmul.f32 0.99, %v728_v11 }
 0x64a   :  { %v740_v59 = vadd.f32 %v734_v51, %v1481_v25 }
 0x64b   :  { %v706_v49 = vpop.f32.mrf.mxu3 }
 0x64c   :  { %v717_v17 = vmul.f32 %v706_v49, %v1419_v39  ;;  %v746_v46 = vmul.f32 %v740_v59, %v1431_v47  ;;  %v785_v49 = vmul.f32 %v740_v59, %v1471_v14 }
 0x64e   :  { %v729_v57 = vsub.f32 %v717_v17, %v723_v56 }
 0x650   :  { %v735_v34 = vmul.f32 0.99, %v729_v57 }
 0x652   :  { %v741_v48 = vadd.f32 %v735_v34, %v1485_v29 }
 0x653   :  { %v709_v61 = vpop.f32.mrf.mxu3 }
 0x654   :  { %v718_v0 = vmul.f32 %v709_v61, %v1411_v33  ;;  %v747_v54 = vmul.f32 %v741_v48, %v1419_v39  ;;  %v786_v34 = vmul.f32 %v741_v48, %v1479_v23 }
 0x656   :  { %v751_v2 = vpack.c.bf16 %v747_v54, %v746_v46  ;;  %v730_v31 = vsub.f32 %v718_v0, %v724_v1 }
 0x658   :  { %v736_v63 = vmul.f32 0.99, %v730_v31 }
 0x65a   :  { %v742_v10 = vadd.f32 %v736_v63, %v1503_v53 }
 0x65b   :  { %v711_v6 = vpop.f32.mrf.mxu3 }
 0x65c   :  { %v719_v43 = vmul.f32 %v711_v6, %v1421_v40  ;;  %v748_v60 = vmul.f32 %v742_v10, %v1411_v33  ;;  %v787_v6 = vmul.f32 %v742_v10, %v1491_v38 }
 0x65e   :  { %v731_v37 = vsub.f32 %v719_v43, %v725_v8 }
 0x660   :  { %v737_v12 = vmul.f32 0.99, %v731_v37 }
 0x662   :  { %v743_v4 = vadd.f32 %v737_v12, %v1509_v58 }
 0x664   :  { %v749_v16 = vmul.f32 %v743_v4, %v1421_v40  ;;  %v788_v12 = vmul.f32 %v743_v4, %v1500_v50 }
 0x666   :  { %v752_v18 = vpack.c.bf16 %v749_v16, %v748_v60 }
 0x668   :  { %758 = vmatpush.bf16.msra.mxu0 %v752_v18 }
 0x66c   :  { %759 = vmatpush.bf16.msra.mxu0 %v751_v2 }
 0x670   :  { %760 = vmatpush.bf16.msra.mxu0 %v750_v41 }
 0x673   :  { %1178 = vmatmul.msk.bf16.vlgmr.msra.gmra.mxu0 %vm308_vm1, %v1381_v15 }
 0x683   :  { %1179 = vmatmul.msk.bf16.gmra.mxu0 %vm308_vm1, %v1384_v35 }
 0x693   :  { %1180 = vmatmul.msk.bf16.gmra.mxu0 %vm308_vm1, %v1388_v44 }
 0x6f0   :  { %v762_v7 = vpop.f32.mrf.mxu0 }
 0x6f1   :  { %v777_v36 = vmul.f32 %v762_v7, %v1441_v55 }
 0x6f3   :  { %v789_v22 = vsub.f32 %v777_v36, %v783_v20 }
 0x6f5   :  { %v795_v27 = vmul.f32 0.99, %v789_v22 }
 0x6f7   :  { %v801_v42 = vadd.f32 %v795_v27, %v1461_v5 }
 0x6f8   :  { %v764_v24 = vpop.f32.mrf.mxu0 }
 0x6f9   :  { %v778_v28 = vmul.f32 %v764_v24, %v1438_v52  ;;  %v807_v11 = vmul.f32 %v801_v42, %v1441_v55  ;;  %v846_v24 = vmul.f32 %v801_v42, %v1453_v62 }
 0x6fb   :  { %v790_v32 = vsub.f32 %v778_v28, %v784_v13 }
 0x6fd   :  { %v796_v19 = vmul.f32 0.99, %v790_v32 }
 0x6ff   :  { %v802_v26 = vadd.f32 %v796_v19, %v1465_v9 }
 0x700   :  { %v767_v45 = vpop.f32.mrf.mxu0 }
 0x701   :  { %v779_v41 = vmul.f32 %v767_v45, %v1431_v47  ;;  %v808_v30 = vmul.f32 %v802_v26, %v1438_v52  ;;  %v847_v19 = vmul.f32 %v802_v26, %v1459_v3 }
 0x703   :  { %v813_v51 = vpack.c.bf16 %v808_v30, %v807_v11  ;;  %v791_v17 = vsub.f32 %v779_v41, %v785_v49 }
 0x705   :  { %v797_v57 = vmul.f32 0.99, %v791_v17 }
 0x707   :  { %v803_v0 = vadd.f32 %v797_v57, %v1481_v25 }
 0x708   :  { %v769_v56 = vpop.f32.mrf.mxu0 }
 0x709   :  { %v780_v21 = vmul.f32 %v769_v56, %v1419_v39  ;;  %v809_v31 = vmul.f32 %v803_v0, %v1431_v47  ;;  %v848_v56 = vmul.f32 %v803_v0, %v1471_v14 }
 0x70b   :  { %v792_v61 = vsub.f32 %v780_v21, %v786_v34 }
 0x70d   :  { %v798_v46 = vmul.f32 0.99, %v792_v61 }
 0x70f   :  { %v804_v54 = vadd.f32 %v798_v46, %v1485_v29 }
 0x710   :  { %v772_v1 = vpop.f32.mrf.mxu0 }
 0x711   :  { %v781_v2 = vmul.f32 %v772_v1, %v1411_v33  ;;  %v810_v59 = vmul.f32 %v804_v54, %v1419_v39  ;;  %v849_v46 = vmul.f32 %v804_v54, %v1479_v23 }
 0x713   :  { %v814_v63 = vpack.c.bf16 %v810_v59, %v809_v31  ;;  %v793_v43 = vsub.f32 %v781_v2, %v787_v6 }
 0x715   :  { %v799_v37 = vmul.f32 0.99, %v793_v43 }
 0x717   :  { %v805_v16 = vadd.f32 %v799_v37, %v1503_v53 }
 0x718   :  { %v774_v8 = vpop.f32.mrf.mxu0 }
 0x719   :  { %v782_v48 = vmul.f32 %v774_v8, %v1421_v40  ;;  %v811_v36 = vmul.f32 %v805_v16, %v1411_v33  ;;  %v850_v8 = vmul.f32 %v805_v16, %v1491_v38 }
 0x71b   :  { %v794_v60 = vsub.f32 %v782_v48, %v788_v12 }
 0x71d   :  { %v800_v18 = vmul.f32 0.99, %v794_v60 }
 0x71f   :  { %v806_v7 = vadd.f32 %v800_v18, %v1509_v58 }
 0x721   :  { %v812_v20 = vmul.f32 %v806_v7, %v1421_v40  ;;  %v851_v18 = vmul.f32 %v806_v7, %v1500_v50 }
 0x723   :  { %v815_v22 = vpack.c.bf16 %v812_v20, %v811_v36 }
 0x725   :  { %821 = vmatpush.bf16.msrb.mxu1 %v815_v22 }
 0x729   :  { %822 = vmatpush.bf16.msrb.mxu1 %v814_v63 }
 0x72d   :  { %823 = vmatpush.bf16.msrb.mxu1 %v813_v51 }
 0x730   :  { %1181 = vmatmul.msk.bf16.vlgmr.msrb.gmra.mxu1 %vm308_vm1, %v1381_v15 }
 0x740   :  { %1182 = vmatmul.msk.bf16.gmra.mxu1 %vm308_vm1, %v1384_v35 }
 0x750   :  { %1183 = vmatmul.msk.bf16.gmra.mxu1 %vm308_vm1, %v1388_v44 }
 0x7ad   :  { %v825_v10 = vpop.f32.mrf.mxu1 }
 0x7ae   :  { %v840_v4 = vmul.f32 %v825_v10, %v1441_v55 }
 0x7b0   :  { %v852_v27 = vsub.f32 %v840_v4, %v846_v24 }
 0x7b2   :  { %v858_v13 = vmul.f32 0.99, %v852_v27 }
 0x7b4   :  { %v864_v41 = vadd.f32 %v858_v13, %v1461_v5 }
 0x7b5   :  { %v827_v28 = vpop.f32.mrf.mxu1 }
 0x7b6   :  { %v841_v32 = vmul.f32 %v827_v28, %v1438_v52  ;;  %v870_v17 = vmul.f32 %v864_v41, %v1441_v55  ;;  %v909_v28 = vmul.f32 %v864_v41, %v1453_v62 }
 0x7b8   :  { %v853_v45 = vsub.f32 %v841_v32, %v847_v19 }
 0x7ba   :  { %v859_v11 = vmul.f32 0.99, %v853_v45 }
 0x7bc   :  { %v865_v30 = vadd.f32 %v859_v11, %v1465_v9 }
 0x7bd   :  { %v830_v49 = vpop.f32.mrf.mxu1 }
 0x7be   :  { %v842_v51 = vmul.f32 %v830_v49, %v1431_v47  ;;  %v871_v42 = vmul.f32 %v865_v30, %v1438_v52  ;;  %v910_v11 = vmul.f32 %v865_v30, %v1459_v3 }
 0x7c0   :  { %v876_v57 = vpack.c.bf16 %v871_v42, %v870_v17  ;;  %v854_v21 = vsub.f32 %v842_v51, %v848_v56 }
 0x7c2   :  { %v860_v61 = vmul.f32 0.99, %v854_v21 }
 0x7c4   :  { %v866_v2 = vadd.f32 %v860_v61, %v1481_v25 }
 0x7c5   :  { %v832_v34 = vpop.f32.mrf.mxu1 }
 0x7c6   :  { %v843_v26 = vmul.f32 %v832_v34, %v1419_v39  ;;  %v872_v43 = vmul.f32 %v866_v2, %v1431_v47  ;;  %v911_v34 = vmul.f32 %v866_v2, %v1471_v14 }
 0x7c8   :  { %v855_v1 = vsub.f32 %v843_v26, %v849_v46 }
 0x7ca   :  { %v861_v31 = vmul.f32 0.99, %v855_v1 }
 0x7cc   :  { %v867_v59 = vadd.f32 %v861_v31, %v1485_v29 }
 0x7cd   :  { %v835_v6 = vpop.f32.mrf.mxu1 }
 0x7ce   :  { %v844_v63 = vmul.f32 %v835_v6, %v1411_v33  ;;  %v873_v0 = vmul.f32 %v867_v59, %v1419_v39  ;;  %v912_v31 = vmul.f32 %v867_v59, %v1479_v23 }
 0x7d0   :  { %v877_v37 = vpack.c.bf16 %v873_v0, %v872_v43  ;;  %v856_v48 = vsub.f32 %v844_v63, %v850_v8 }
 0x7d2   :  { %v862_v60 = vmul.f32 0.99, %v856_v48 }
 0x7d4   :  { %v868_v20 = vadd.f32 %v862_v60, %v1503_v53 }
 0x7d5   :  { %v837_v12 = vpop.f32.mrf.mxu1 }
 0x7d6   :  { %v845_v54 = vmul.f32 %v837_v12, %v1421_v40  ;;  %v874_v4 = vmul.f32 %v868_v20, %v1411_v33  ;;  %v913_v12 = vmul.f32 %v868_v20, %v1491_v38 }
 0x7d8   :  { %v857_v36 = vsub.f32 %v845_v54, %v851_v18 }
 0x7da   :  { %v863_v22 = vmul.f32 0.99, %v857_v36 }
 0x7dc   :  { %v869_v10 = vadd.f32 %v863_v22, %v1509_v58 }
 0x7de   :  { %v875_v24 = vmul.f32 %v869_v10, %v1421_v40  ;;  %v914_v22 = vmul.f32 %v869_v10, %v1500_v50 }
 0x7e0   :  { %v878_v27 = vpack.c.bf16 %v875_v24, %v874_v4 }
 0x7e2   :  { %884 = vmatpush.bf16.msra.mxu2 %v878_v27 }
 0x7e6   :  { %885 = vmatpush.bf16.msra.mxu2 %v877_v37 }
 0x7ea   :  { %886 = vmatpush.bf16.msra.mxu2 %v876_v57 }
 0x7ed   :  { %1184 = vmatmul.msk.bf16.vlgmr.msra.gmra.mxu2 %vm308_vm1, %v1381_v15 }
 0x7fd   :  { %1185 = vmatmul.msk.bf16.gmra.mxu2 %vm308_vm1, %v1384_v35 }
 0x80d   :  { %1186 = vmatmul.msk.bf16.gmra.mxu2 %vm308_vm1, %v1388_v44 }
 0x870   :  { %v888_v16 = vpop.f32.mrf.mxu2 }
 0x871   :  { %v903_v7 = vmul.f32 %v888_v16, %v1441_v55 }
 0x873   :  { %v915_v13 = vsub.f32 %v903_v7, %v909_v28 }
 0x875   :  { %v921_v19 = vmul.f32 0.99, %v915_v13 }
 0x877   :  { %v927_v51 = vadd.f32 %v921_v19, %v1461_v5 }
 0x878   :  { %v890_v32 = vpop.f32.mrf.mxu2 }
 0x879   :  { %v904_v45 = vmul.f32 %v890_v32, %v1438_v52  ;;  %v933_v21 = vmul.f32 %v927_v51, %v1441_v55  ;;  %v972_v32 = vmul.f32 %v927_v51, %v1453_v62 }
 0x87b   :  { %v916_v49 = vsub.f32 %v904_v45, %v910_v11 }
 0x87d   :  { %v922_v17 = vmul.f32 0.99, %v916_v49 }
 0x87f   :  { %v928_v42 = vadd.f32 %v922_v17, %v1465_v9 }
 0x880   :  { %v893_v56 = vpop.f32.mrf.mxu2 }
 0x881   :  { %v905_v57 = vmul.f32 %v893_v56, %v1431_v47  ;;  %v934_v41 = vmul.f32 %v928_v42, %v1438_v52  ;;  %v973_v17 = vmul.f32 %v928_v42, %v1459_v3 }
 0x883   :  { %v939_v61 = vpack.c.bf16 %v934_v41, %v933_v21  ;;  %v917_v26 = vsub.f32 %v905_v57, %v911_v34 }
 0x885   :  { %v923_v1 = vmul.f32 0.99, %v917_v26 }
 0x887   :  { %v929_v63 = vadd.f32 %v923_v1, %v1481_v25 }
 0x888   :  { %v895_v46 = vpop.f32.mrf.mxu2 }
 0x889   :  { %v906_v30 = vmul.f32 %v895_v46, %v1419_v39  ;;  %v935_v48 = vmul.f32 %v929_v63, %v1431_v47  ;;  %v974_v51 = vmul.f32 %v929_v63, %v1471_v14 }
 0x88b   :  { %v918_v6 = vsub.f32 %v906_v30, %v912_v31 }
 0x88d   :  { %v924_v43 = vmul.f32 0.99, %v918_v6 }
 0x88f   :  { %v930_v0 = vadd.f32 %v924_v43, %v1485_v29 }
 0x890   :  { %v898_v8 = vpop.f32.mrf.mxu2 }
 0x891   :  { %v907_v37 = vmul.f32 %v898_v8, %v1411_v33  ;;  %v936_v2 = vmul.f32 %v930_v0, %v1419_v39 }
 0x893   :  { %v940_v60 = vpack.c.bf16 %v936_v2, %v935_v48  ;;  %v919_v54 = vsub.f32 %v907_v37, %v913_v12 }
 0x895   :  { %v925_v36 = vmul.f32 0.99, %v919_v54 }
 0x897   :  { %v931_v24 = vadd.f32 %v925_v36, %v1503_v53 }
 0x898   :  { %v900_v18 = vpop.f32.mrf.mxu2 }
 0x899   :  { %v908_v59 = vmul.f32 %v900_v18, %v1421_v40  ;;  %v937_v7 = vmul.f32 %v931_v24, %v1411_v33  ;;  %v976_v37 = vmul.f32 %v931_v24, %v1491_v38 }
 0x89b   :  { %v920_v4 = vsub.f32 %v908_v59, %v914_v22 }
 0x89d   :  { %v926_v27 = vmul.f32 0.99, %v920_v4 }
 0x89f   :  { %v932_v16 = vadd.f32 %v926_v27, %v1509_v58 }
 0x8a1   :  { %v938_v28 = vmul.f32 %v932_v16, %v1421_v40  ;;  %v977_v54 = vmul.f32 %v932_v16, %v1500_v50 }
 0x8a3   :  { %v941_v13 = vpack.c.bf16 %v938_v28, %v937_v7  ;;  %v1047_v28 = vlaneseq }
 0x8a5   :  { %947 = vmatpush.bf16.msrb.mxu3 %v941_v13 }
 0x8a9   :  { %948 = vmatpush.bf16.msrb.mxu3 %v940_v60 }
 0x8ad   :  { %949 = vmatpush.bf16.msrb.mxu3 %v939_v61 }
 0x8b0   :  { %1187 = vmatmul.msk.bf16.vlgmr.msrb.gmra.mxu3 %vm308_vm1, %v1381_v15 }
 0x8c0   :  { %1188 = vmatmul.msk.bf16.gmra.mxu3 %vm308_vm1, %v1384_v35 }
 0x8d0   :  { %1189 = vmatmul.msk.bf16.gmra.mxu3 %vm308_vm1, %v1388_v44 }
 0x933   :  { %v951_v20 = vpop.f32.mrf.mxu3 }
 0x934   :  { %v966_v10 = vmul.f32 %v951_v20, %v1441_v55 }
 0x936   :  { %v978_v19 = vsub.f32 %v966_v10, %v972_v32  ;;  %v1048_v32 = vand.u32 127, %v1047_v28 }
 0x938   :  { %v984_v11 = vmul.f32 0.99, %v978_v19  ;;  %vm1049_vm5 = vcmp.lt.s32.totalorder %v1048_v32, 4 }
 0x93a   :  { %v990_v57 = vadd.f32 %v984_v11, %v1461_v5  ;;  %v975_v5 = vmul.f32 %v930_v0, %v1479_v23 }
 0x93b   :  { %v953_v45 = vpop.f32.mrf.mxu3 }
 0x93c   :  { %v967_v49 = vmul.f32 %v953_v45, %v1438_v52  ;;  %v996_v26 = vmul.f32 %v990_v57, %v1441_v55 }
 0x93e   :  { %v979_v56 = vsub.f32 %v967_v49, %v973_v17 }
 0x940   :  { %v985_v21 = vmul.f32 0.99, %v979_v56 }
 0x942   :  { %v991_v41 = vadd.f32 %v985_v21, %v1465_v9 }
 0x943   :  { %v956_v34 = vpop.f32.mrf.mxu3 }
 0x944   :  { %v968_v61 = vmul.f32 %v956_v34, %v1431_v47  ;;  %v997_v62 = vmul.f32 %v991_v41, %v1438_v52 }
 0x946   :  { %v1002_v46 = vpack.c.bf16 %v997_v62, %v996_v26  ;;  %v980_v1 = vsub.f32 %v968_v61, %v974_v51 }
 0x948   :  { %v986_v31 = vmul.f32 0.99, %v980_v1 }
 0x94a   :  { %v992_v9 = vadd.f32 %v986_v31, %v1481_v25 }
 0x94b   :  { %v958_v30 = vpop.f32.mrf.mxu3 }
 0x94c   :  { %v969_v3 = vmul.f32 %v958_v30, %v1419_v39  ;;  %v998_v52 = vmul.f32 %v992_v9, %v1431_v47  ;;  %v1031_v10 = vmul.f32 %v992_v9, %v1471_v14 }
 0x94e   :  { %v981_v42 = vsub.f32 %v969_v3, %v975_v5 }
 0x950   :  { %v987_v6 = vmul.f32 0.99, %v981_v42 }
 0x952   :  { %v993_v43 = vadd.f32 %v987_v6, %v1485_v29 }
 0x953   :  { %v961_v8 = vpop.f32.mrf.mxu3 }
 0x954   :  { %v970_v55 = vmul.f32 %v961_v8, %v1411_v33  ;;  %v999_v63 = vmul.f32 %v993_v43, %v1419_v39  ;;  %v1032_v49 = vmul.f32 %v993_v43, %v1479_v23 }
 0x956   :  { %v1003_v48 = vpack.c.bf16 %v999_v63, %v998_v52  ;;  %v982_v2 = vsub.f32 %v970_v55, %v976_v37 }
 0x958   :  { %v988_v60 = vmul.f32 0.99, %v982_v2 }
 0x95a   :  { %v994_v36 = vadd.f32 %v988_v60, %v1503_v53 }
 0x95b   :  { %v963_v12 = vpop.f32.mrf.mxu3 }
 0x95c   :  { %v971_v0 = vmul.f32 %v963_v12, %v1421_v40  ;;  %v1000_v4 = vmul.f32 %v994_v36, %v1411_v33  ;;  %v1033_v21 = vmul.f32 %v994_v36, %v1491_v38 }
 0x95e   :  { %v983_v18 = vsub.f32 %v971_v0, %v977_v54 }
 0x960   :  { %v989_v59 = vmul.f32 0.99, %v983_v18 }
 0x962   :  { %v995_v22 = vadd.f32 %v989_v59, %v1509_v58 }
 0x964   :  { %v1001_v27 = vmul.f32 %v995_v22, %v1421_v40  ;;  %v1034_v26 = vmul.f32 %v995_v22, %v1500_v50 }
 0x966   :  { %v1004_v7 = vpack.c.bf16 %v1001_v27, %v1000_v4 }
 0x968   :  { %1010 = vmatpush.bf16.msrb.mxu0 %v1004_v7 }
 0x96c   :  { %1011 = vmatpush.bf16.msrb.mxu0 %v1003_v48 }
 0x970   :  { %1012 = vmatpush.bf16.msrb.mxu0 %v1002_v46 }
 0x973   :  { %1190 = vmatmul.msk.bf16.vlgmr.msrb.gmra.mxu0 %vm308_vm1, %v1381_v15 }
 0x983   :  { %1191 = vmatmul.msk.bf16.gmra.mxu0 %vm308_vm1, %v1384_v35 }
 0x993   :  { %1192 = vmatmul.msk.bf16.gmra.mxu0 %vm308_vm1, %v1388_v44 }
 0x9f0   :  { %v1014_v24 = vpop.f32.mrf.mxu0 }
 0x9f8   :  { %v1015_v16 = vpop.f32.mrf.mxu0 }
 0xa00   :  { %v1017_v13 = vpop.f32.mrf.mxu0 }
 0xa01   :  { %v1027_v20 = vmul.f32 %v1017_v13, %v1431_v47 }
 0xa03   :  { %v1035_v19 = vsub.f32 %v1027_v20, %v1031_v10 }
 0xa05   :  { %v1039_v45 = vmul.f32 0.99, %v1035_v19 }
 0xa07   :  { %v1043_v15 = vadd.f32 %v1039_v45, %v1481_v25 }
 0xa08   :  { %v1019_v11 = vpop.f32.mrf.mxu0 }
 0xa09   :  { %v1028_v35 = vmul.f32 %v1019_v11, %v1419_v39  ;;  %v1050_v44 = vsel %vm1049_vm5, %v1043_v15, -1e+30 }
 0xa0a   :  { %1054 = vmax.xlane.f32.xlu0 %v1050_v44 }
 0xa0b   :  { %v1036_v17 = vsub.f32 %v1028_v35, %v1032_v49 }
 0xa0d   :  { %v1040_v56 = vmul.f32 0.99, %v1036_v17 }
 0xa0f   :  { %v1044_v47 = vadd.f32 %v1040_v56, %v1485_v29 }
 0xa10   :  { %v1022_v57 = vpop.f32.mrf.mxu0 }
 0xa11   :  { %v1029_v14 = vmul.f32 %v1022_v57, %v1411_v33  ;;  %v1051_v41 = vsel %vm1049_vm5, %v1044_v47, -1e+30 }
 0xa12   :  { %1056 = vmax.xlane.f32.xlu1 %v1051_v41 }
 0xa13   :  { %v1037_v25 = vsub.f32 %v1029_v14, %v1033_v21 }
 0xa15   :  { %v1041_v34 = vmul.f32 0.99, %v1037_v25 }
 0xa17   :  { %v1045_v39 = vadd.f32 %v1041_v34, %v1503_v53 }
 0xa18   :  { %v1024_v23 = vpop.f32.mrf.mxu0 }
 0xa19   :  { %v1030_v61 = vmul.f32 %v1024_v23, %v1421_v40  ;;  %v1052_v62 = vsel %vm1049_vm5, %v1045_v39, -1e+30 }
 0xa1a   :  { %1058 = vmax.xlane.f32.xlu2 %v1052_v62 }
 0xa1b   :  { %v1038_v29 = vsub.f32 %v1030_v61, %v1034_v26 }
 0xa1d   :  { %v1042_v51 = vmul.f32 0.99, %v1038_v29 }
 0xa1f   :  { %v1046_v33 = vadd.f32 %v1042_v51, %v1509_v58 }
 0xa21   :  { %v1053_v38 = vsel %vm1049_vm5, %v1046_v33, -1e+30 }
 0xa22   :  { %1060 = vmax.xlane.f32.xlu0 %v1053_v38 }
 0xa7d   :  { %v1055_v46 = vpop.xlane.xlu0 %1054 }
 0xa7e   :  { %v1062_v1 = vsub.f32 %v1050_v44, %v1055_v46 }
 0xa80   :  { %v1066_v30 = vmul.f32 1.442695, %v1062_v1 }
 0xa82   :  { %1231 = vpow2.f32 %v1066_v30 }
 0xa85   :  { %v1057_v53 = vpop.xlane.xlu1 %1056 }
 0xa86   :  { %v1063_v31 = vsub.f32 %v1051_v41, %v1057_v53 }
 0xa88   :  { %v1232_v3 = vpop.eup %1231  ;;  %v1068_v40 = vmul.f32 1.442695, %v1063_v31 }
 0xa89   :  { %1074 = vadd.xlane.f32.xlu1 %v1232_v3 }
 0xa8a   :  { %1233 = vpow2.f32 %v1068_v40 }
 0xa8d   :  { %v1059_v50 = vpop.xlane.xlu2 %1058 }
 0xa8e   :  { %v1064_v5 = vsub.f32 %v1052_v62, %v1059_v50 }
 0xa90   :  { %v1234_v42 = vpop.eup %1233  ;;  %v1070_v9 = vmul.f32 1.442695, %v1064_v5 }
 0xa91   :  { %1076 = vadd.xlane.f32.xlu2 %v1234_v42 }
 0xa92   :  { %1235 = vpow2.f32 %v1070_v9 }
 0xa95   :  { %v1061_v58 = vpop.xlane.xlu0 %1060 }
 0xa96   :  { %v1065_v6 = vsub.f32 %v1053_v38, %v1061_v58 }
 0xa98   :  { %v1236_v43 = vpop.eup %1235  ;;  %v1072_v8 = vmul.f32 1.442695, %v1065_v6 }
 0xa99   :  { %1078 = vadd.xlane.f32.xlu0 %v1236_v43 }
 0xa9a   :  { %1237 = vpow2.f32 %v1072_v8 }
 0xaa0   :  { %v1238_v55 = vpop.eup %1237 }
 0xaa1   :  { %1080 = vadd.xlane.f32.xlu1 %v1238_v55 }
 0xafc   :  { %v1075_v52 = vpop.xlane.xlu1 %1074 }
 0xafd   :  { %1239 = vrcp.f32 %v1075_v52 }
 0xb03   :  { %v1240_v63 = vpop.eup %1239 }
 0xb04   :  { %v1086_v37 = vmul.f32 %v1240_v63, %v1232_v3  ;;  %v1077_v48 = vpop.xlane.xlu2 %1076 }
 0xb05   :  { %1241 = vrcp.f32 %v1077_v48 }
 0xb06   :  { %1090 = vst [vmem:[#allocation5] sm:$0xff] %v1086_v37 }
 0xb0b   :  { %v1242_v2 = vpop.eup %1241 }
 0xb0c   :  { %v1087_v12 = vmul.f32 %v1242_v2, %v1234_v42  ;;  %v1079_v60 = vpop.xlane.xlu0 %1078 }
 0xb0d   :  { %1243 = vrcp.f32 %v1079_v60 }
 0xb0e   :  { %1091 = vst [vmem:[#allocation5 + $0x8] sm:$0xff] %v1087_v12 }
 0xb13   :  { %v1244_v0 = vpop.eup %1243 }
 0xb14   :  { %v1088_v54 = vmul.f32 %v1244_v0, %v1236_v43  ;;  %v1081_v18 = vpop.xlane.xlu1 %1080 }
 0xb15   :  { %1245 = vrcp.f32 %v1081_v18 }
 0xb16   :  { %1092 = vst [vmem:[#allocation5 + $0x10] sm:$0xff] %v1088_v54 }
 0xb1b   :  { %v1246_v36 = vpop.eup %1245 }
 0xb1c   :  { %v1089_v59 = vmul.f32 %v1246_v36, %v1238_v55 }
 0xb1e   :  { %1093 = vst [vmem:[#allocation5 + $0x18] sm:$0xff] %v1089_v59 }
 0xb1f   :  { %1106 = dma.vmem_to_hbm [thread:$0]  %s1099_s2, 512, %s1101_s10, [#allocation4], %s1300_s20, %s1300_s20, %s1301_s21  }
 0xb20   :  { %1297 = dma.done.wait [#allocation4], 512  }
 0xb21   :  { %1298 = vsyncadd [#allocation4], 4294966784 }
 0xb22   :  { %1111 = vsyncpa [#allocation3], 1 }
 0xb23   :  { %1112 = vsyncpa [#allocation4], 1 }

</bundles_post_ra>
